<compile_context>
chip_gen: v6e
topology: v6e:2x2x1
jax: 0.10.0
libtpu: 0.0.40
codegen_flags: <defaults>
</compile_context>

<pallas_src>
import functools

import jax
import jax.numpy as jnp
from jax import lax
from jax.experimental import pallas as pl
from jax.experimental.pallas import tpu as pltpu


# ------------------------- helpers / device config -------------------------

def _round_up(x, m):
    return (x + m - 1) // m * m


def _pad2(a, rows, cols):
    return jnp.pad(a, ((0, rows - a.shape[0]), (0, cols - a.shape[1])))


def _device_cfg():
    # (node-row tile TM, edge tile TE, vmem limit). Tiles are bounded, so VMEM per grid
    # step is a few MiB regardless of graph size.
    try:
        kind = jax.devices()[0].device_kind.lower()
    except Exception:
        kind = ""
    if "v5 lite" in kind or "v5e" in kind or "v5lite" in kind:
        return 128, 2048, 64 * 1024 * 1024     # 4x128^2 MXU, 128 MiB physical VMEM
    if "v6" in kind:
        return 256, 2048, 96 * 1024 * 1024     # 128 MiB VMEM -> deep buffering is cheap
    if "v7" in kind:
        return 256, 2048, 48 * 1024 * 1024     # 64 MiB / TC -> keep explicit headroom
    return 256, 2048, 64 * 1024 * 1024


_TM_DEFAULT, _TE_DEFAULT, _VMEM_LIMIT = _device_cfg()


def _cparams(semantics):
    return pltpu.CompilerParams(dimension_semantics=semantics,
                                vmem_limit_bytes=_VMEM_LIMIT)


# ------------------------- Pallas kernels -------------------------

def _linear_kernel(x_ref, w_ref, b_ref, y_ref):
    # Y = X @ W + b, computed exactly once per layer-0 row tile; stored bf16.
    y = jnp.dot(x_ref[...].astype(jnp.float32), w_ref[...],
                preferred_element_type=jnp.float32) + b_ref[...]
    y_ref[...] = y.astype(y_ref.dtype)


def linear(x, w, b, *, tm):
    n_pad, d_in = x.shape
    d_out = w.shape[1]
    return pl.pallas_call(
        _linear_kernel,
        out_shape=jax.ShapeDtypeStruct((n_pad, d_out), jnp.bfloat16),
        grid=(n_pad // tm,),
        in_specs=[
            pl.BlockSpec((tm, d_in), lambda i: (i, 0)),
            pl.BlockSpec((d_in, d_out), lambda i: (0, 0)),
            pl.BlockSpec((1, d_out), lambda i: (0, 0)),
        ],
        out_specs=pl.BlockSpec((tm, d_out), lambda i: (i, 0)),
        compiler_params=_cparams(("parallel",)),
    )(x, w, b)


def _edge_agg_kernel(s_ref, y_ref, m_ref, acc_ref):
    # M[e_tile] = sum_i S[i_tile, e_tile]^T @ Y[i_tile]; f32 scratch acc, bf16 output on last step.
    @pl.when(pl.program_id(1) == 0)
    def _():
        acc_ref[...] = jnp.zeros_like(acc_ref)

    # contract the node dim (dim 0 of both operands) -> (TE, d_out); S^T is never built in HBM.
    acc_ref[...] += lax.dot_general(
        s_ref[...].astype(jnp.float32), y_ref[...].astype(jnp.float32),
        (((0,), (0,)), ((), ())), preferred_element_type=jnp.float32)

    @pl.when(pl.program_id(1) == pl.num_programs(1) - 1)
    def _():
        m_ref[...] = acc_ref[...].astype(m_ref.dtype)


def edge_agg(s, y, *, tm, te):
    n_pad, e_pad = s.shape
    d_out = y.shape[1]
    return pl.pallas_call(
        _edge_agg_kernel,
        out_shape=jax.ShapeDtypeStruct((e_pad, d_out), jnp.bfloat16),
        grid=(e_pad // te, n_pad // tm),                     # reduction (node) axis last
        in_specs=[
            pl.BlockSpec((tm, te), lambda e, i: (i, e)),     # S tile (bf16)
            pl.BlockSpec((tm, d_out), lambda e, i: (i, 0)),  # Y tile (bf16)
        ],
        out_specs=pl.BlockSpec((te, d_out), lambda e, i: (e, 0)),
        scratch_shapes=[pltpu.VMEM((te, d_out), jnp.float32)],
        compiler_params=_cparams(("parallel", "arbitrary")),
    )(s, y)


def _node_linear_kernel(s_ref, m_ref, w_ref, b_ref, y_ref, acc_ref):
    # acc[i_tile] = sum_e S[i_tile, e_tile] @ M[e_tile]; epilogue: relu + layer-1 linear fused.
    @pl.when(pl.program_id(1) == 0)
    def _():
        acc_ref[...] = jnp.zeros_like(acc_ref)

    acc_ref[...] += jnp.dot(s_ref[...].astype(jnp.float32),
                            m_ref[...].astype(jnp.float32),
                            preferred_element_type=jnp.float32)

    @pl.when(pl.program_id(1) == pl.num_programs(1) - 1)
    def _():
        h = jnp.maximum(acc_ref[...], 0.0)                   # relu(L @ (X W0 + b0))
        y = jnp.dot(h, w_ref[...], preferred_element_type=jnp.float32) + b_ref[...]
        y_ref[...] = y.astype(y_ref.dtype)                   # Y1 = h @ W1 + b1 (bf16)


def node_linear(s, m, w, b, *, tm, te):
    n_pad, e_pad = s.shape
    d_in = m.shape[1]
    d_out = w.shape[1]
    return pl.pallas_call(
        _node_linear_kernel,
        out_shape=jax.ShapeDtypeStruct((n_pad, d_out), jnp.bfloat16),
        grid=(n_pad // tm, e_pad // te),
        in_specs=[
            pl.BlockSpec((tm, te), lambda i, e: (i, e)),
            pl.BlockSpec((te, d_in), lambda i, e: (e, 0)),
            pl.BlockSpec((d_in, d_out), lambda i, e: (0, 0)),
            pl.BlockSpec((1, d_out), lambda i, e: (0, 0)),
        ],
        out_specs=pl.BlockSpec((tm, d_out), lambda i, e: (i, 0)),
        scratch_shapes=[pltpu.VMEM((tm, d_in), jnp.float32)],
        compiler_params=_cparams(("parallel", "arbitrary")),
    )(s, m, w, b)


def _node_proj_kernel(s_ref, m_ref, wp1_ref, bp1_ref, wp2_ref, bp2_ref,
                      emb_ref, z_ref, acc_ref):
    # Second HGNN node aggregation (no activation) with proj_head fused into the epilogue.
    @pl.when(pl.program_id(1) == 0)
    def _():
        acc_ref[...] = jnp.zeros_like(acc_ref)

    acc_ref[...] += jnp.dot(s_ref[...].astype(jnp.float32),
                            m_ref[...].astype(jnp.float32),
                            preferred_element_type=jnp.float32)

    @pl.when(pl.program_id(1) == pl.num_programs(1) - 1)
    def _():
        x_emb = acc_ref[...]
        emb_ref[...] = x_emb
        h = jnp.maximum(
            jnp.dot(x_emb, wp1_ref[...], preferred_element_type=jnp.float32) + bp1_ref[...],
            0.0)
        z_ref[...] = jnp.dot(h, wp2_ref[...], preferred_element_type=jnp.float32) + bp2_ref[...]


def node_proj(s, m, wp1, bp1, wp2, bp2, *, tm, te):
    n_pad, e_pad = s.shape
    d_emb = m.shape[1]
    d_proj = wp1.shape[1]
    return pl.pallas_call(
        _node_proj_kernel,
        out_shape=(jax.ShapeDtypeStruct((n_pad, d_emb), jnp.float32),
                   jax.ShapeDtypeStruct((n_pad, d_proj), jnp.float32)),
        grid=(n_pad // tm, e_pad // te),
        in_specs=[
            pl.BlockSpec((tm, te), lambda i, e: (i, e)),
            pl.BlockSpec((te, d_emb), lambda i, e: (e, 0)),
            pl.BlockSpec((d_emb, d_proj), lambda i, e: (0, 0)),
            pl.BlockSpec((1, d_proj), lambda i, e: (0, 0)),
            pl.BlockSpec((d_proj, d_proj), lambda i, e: (0, 0)),
            pl.BlockSpec((1, d_proj), lambda i, e: (0, 0)),
        ],
        out_specs=(pl.BlockSpec((tm, d_emb), lambda i, e: (i, 0)),
                   pl.BlockSpec((tm, d_proj), lambda i, e: (i, 0))),
        scratch_shapes=[pltpu.VMEM((tm, d_emb), jnp.float32)],
        compiler_params=_cparams(("parallel", "arbitrary")),
    )(s, m, wp1, bp1, wp2, bp2)


# ------------------------- graph prep / params / forward -------------------------

def prepare_graph(H, *, tm=None, te=None):
    """Per-graph preprocessing. H is static per graph -> call once and cache the result."""
    N, E = H.shape
    tm = _TM_DEFAULT if tm is None else tm
    te = _TE_DEFAULT if te is None else te
    tm = min(tm, _round_up(N, 128))     # lane/sublane-dense tiles even for tiny graphs
    te = min(te, _round_up(E, 128))
    n_pad = _round_up(N, tm)            # no rows/edges silently dropped
    e_pad = _round_up(E, te)

    dv = jnp.maximum(H.sum(axis=1), 1.0)
    de = jnp.maximum(H.sum(axis=0), 1.0)
    # Symmetric factor: L = S @ S^T with S = D_v^{-1/2} H D_e^{-1/2}  (W_e = I).
    S = H * (1.0 / jnp.sqrt(dv))[:, None] * (1.0 / jnp.sqrt(de))[None, :]
    s_pad = _pad2(S, n_pad, e_pad).astype(jnp.bfloat16)   # zero pad rows/cols never leak
    return dict(s=s_pad, n=N, e=E, tm=tm, te=te)


def init_params(key, in_dim, hidden_dim, emb_dim, proj_dim):
    ks = jax.random.split(key, 4)

    def lin(k, din, dout):
        w = jax.random.normal(k, (din, dout), jnp.float32) * (1.0 / jnp.sqrt(din))
        b = jnp.zeros((1, dout), jnp.float32)
        return w, b

    w0, b0 = lin(ks[0], in_dim, hidden_dim)      # HGNNConv layer 0 theta
    w1, b1 = lin(ks[1], hidden_dim, emb_dim)     # HGNNConv layer 1 theta
    wp1, bp1 = lin(ks[2], emb_dim, proj_dim)     # proj_head Linear 1
    wp2, bp2 = lin(ks[3], proj_dim, proj_dim)    # proj_head Linear 2
    return dict(w0=w0, b0=b0, w1=w1, b1=b1, wp1=wp1, bp1=bp1, wp2=wp2, bp2=bp2)


@functools.partial(jax.jit, static_argnames=("tm", "te"))
def _forward(x, s_pad, w0, b0, w1, b1, wp1, bp1, wp2, bp2, *, tm, te):
    n, in_dim = x.shape
    n_pad = s_pad.shape[0]
    hidden, emb, proj = w0.shape[1], w1.shape[1], wp1.shape[1]
    in_p = _round_up(in_dim, 128)
    hid_p = _round_up(hidden, 128)
    emb_p = _round_up(emb, 128)
    proj_p = _round_up(proj, 128)

    # Zero-padded weight/bias rows & columns stay exactly zero -> pad lanes never leak.
    x_p = _pad2(x, n_pad, in_p).astype(jnp.bfloat16)
    w0p = _pad2(w0, in_p, hid_p);    b0p = _pad2(b0, 1, hid_p)
    w1p = _pad2(w1, hid_p, emb_p);   b1p = _pad2(b1, 1, emb_p)
    wp1p = _pad2(wp1, emb_p, proj_p); bp1p = _pad2(bp1, 1, proj_p)
    wp2p = _pad2(wp2, proj_p, proj_p); bp2p = _pad2(bp2, 1, proj_p)

    y0 = linear(x_p, w0p, b0p, tm=tm)                       # X W0 + b0           (N_pad, hid_p) bf16
    m0 = edge_agg(s_pad, y0, tm=tm, te=te)                  # S^T Y0              (E_pad, hid_p) bf16
    y1 = node_linear(s_pad, m0, w1p, b1p, tm=tm, te=te)     # relu(S M0) W1 + b1  (N_pad, emb_p) bf16
    m1 = edge_agg(s_pad, y1, tm=tm, te=te)                  # S^T Y1              (E_pad, emb_p) bf16
    x_emb_p, z_p = node_proj(s_pad, m1, wp1p, bp1p, wp2p, bp2p, tm=tm, te=te)

    return z_p[:n, :proj], x_emb_p[:n, :emb]


def graph_encoder_forward(x, adj, params):
    # branch='anchor'/None only changes the training-time dropedge rate.
    # TODO(synk): drop_hyperedges / nn.Dropout are stochastic training-time ops; modeled as eval-mode no-ops.
    graph = adj if isinstance(adj, dict) else prepare_graph(adj)
    return _forward(x, graph["s"],
                    params["w0"], params["b0"], params["w1"], params["b1"],
                    params["wp1"], params["bp1"], params["wp2"], params["bp2"],
                    tm=graph["tm"], te=graph["te"])


# ------------------------- demo / check -------------------------

if __name__ == "__main__":
    N, E = 128, 32
    in_dim, hidden_dim, emb_dim, proj_dim = 32, 64, 32, 32

    key = jax.random.PRNGKey(0)
    kx, kh, kp = jax.random.split(key, 3)

    x = jax.random.normal(kx, (N, in_dim), jnp.float32)
    H = (jax.random.uniform(kh, (N, E)) < 0.15).astype(jnp.float32)
    # guarantee every node is in >=1 hyperedge and every hyperedge is non-empty
    H = H.at[jnp.arange(N), jnp.arange(N) % E].set(1.0)

    params = init_params(kp, in_dim, hidden_dim, emb_dim, proj_dim)
    graph = prepare_graph(H)              # hoisted / cacheable per-graph preprocessing

    z, x_emb = graph_encoder_forward(x, graph, params)
    jax.block_until_ready((z, x_emb))

    # pure-JAX reference mirroring kernel precision (bf16 storage, f32 compute/accumulation)
    r = lambda v: v.astype(jnp.bfloat16).astype(jnp.float32)
    S = graph["s"].astype(jnp.float32)[:N, :E]
    y0 = r(r(x) @ params["w0"] + params["b0"])
    m0 = r(S.T @ y0)
    y1 = r(jnp.maximum(S @ m0, 0.0) @ params["w1"] + params["b1"])
    m1 = r(S.T @ y1)
    x_emb_ref = S @ m1
    z_ref = (jnp.maximum(x_emb_ref @ params["wp1"] + params["bp1"], 0.0)
             @ params["wp2"] + params["bp2"])

    assert z.shape == (N, proj_dim) and x_emb.shape == (N, emb_dim)
    assert jnp.allclose(x_emb, x_emb_ref, atol=2e-2, rtol=2e-2), "embedding mismatch vs reference"
    assert jnp.allclose(z, z_ref, atol=2e-2, rtol=2e-2), "projection mismatch vs reference"

    print("KERNEL_OK")
</pallas_src>

<mosaic_0001>
module attributes {stable_mosaic.version = 11 : i64} {
  func.func @_linear_kernel(%arg0: i32, %arg1: memref<128x128xbf16, #tpu.memory_space<vmem>>, %arg2: memref<128x128xf32, #tpu.memory_space<vmem>>, %arg3: memref<1x128xf32, #tpu.memory_space<vmem>>, %arg4: memref<128x128xbf16, #tpu.memory_space<vmem>>) attributes {dimension_semantics = [#tpu.dimension_semantics<parallel>], iteration_bounds = array<i64: 1>, scalar_prefetch = 0 : i64, scratch_operands = 0 : i64, tpu.core_type = #tpu.core_type<tc>, window_params = [{transform_indices = @transform_0, window_bounds = array<i64: 128, 128>}, {pipeline_mode = #tpu.pipeline_mode<synchronous>, transform_indices = @transform_1, window_bounds = array<i64: 128, 128>}, {pipeline_mode = #tpu.pipeline_mode<synchronous>, transform_indices = @transform_2, window_bounds = array<i64: 1, 128>}, {transform_indices = @transform_3, window_bounds = array<i64: 128, 128>}]} {
    %c0 = arith.constant 0 : index
    %c0_0 = arith.constant 0 : index
    %0 = vector.load %arg1[%c0, %c0_0] : memref<128x128xbf16, #tpu.memory_space<vmem>>, vector<128x128xbf16>
    %1 = arith.extf %0 : vector<128x128xbf16> to vector<128x128xf32>
    %c0_1 = arith.constant 0 : index
    %c0_2 = arith.constant 0 : index
    %2 = vector.load %arg2[%c0_1, %c0_2] : memref<128x128xf32, #tpu.memory_space<vmem>>, vector<128x128xf32>
    %cst = arith.constant dense<0.000000e+00> : vector<128x128xf32>
    %3 = tpu.matmul %1, %2, %cst {dimension_numbers = #tpu.dot_dimension_numbers<[1], [0], [0], [1], [0, 0, 1, 1], [], []>} : vector<128x128xf32>, vector<128x128xf32>, vector<128x128xf32> -> vector<128x128xf32>
    %c0_3 = arith.constant 0 : index
    %c0_4 = arith.constant 0 : index
    %4 = vector.load %arg3[%c0_3, %c0_4] : memref<1x128xf32, #tpu.memory_space<vmem>>, vector<1x128xf32>
    %5 = vector.broadcast %4 : vector<1x128xf32> to vector<128x128xf32>
    %6 = arith.addf %3, %5 : vector<128x128xf32>
    %7 = arith.truncf %6 : vector<128x128xf32> to vector<128x128xbf16>
    %c0_5 = arith.constant 0 : index
    %c0_6 = arith.constant 0 : index
    %8 = vector.load %arg4[%c0_5, %c0_6] : memref<128x128xbf16, #tpu.memory_space<vmem>>, vector<128x128xbf16>
    tpu.vector_store %arg4[%c0_5, %c0_6], %7 {strides = array<i32>} : memref<128x128xbf16, #tpu.memory_space<vmem>>, vector<128x128xbf16>,
    return
  }
  func.func @transform_0(%arg0: i32) -> (i32, i32) {
    %c0_i32 = arith.constant 0 : i32
    %c0_i32_0 = arith.constant 0 : i32
    return %arg0, %c0_i32 : i32, i32
  }
  func.func @transform_1(%arg0: i32) -> (i32, i32) {
    %c0_i32 = arith.constant 0 : i32
    %c0_i32_0 = arith.constant 0 : i32
    %c0_i32_1 = arith.constant 0 : i32
    return %c0_i32, %c0_i32_0 : i32, i32
  }
  func.func @transform_2(%arg0: i32) -> (i32, i32) {
    %c0_i32 = arith.constant 0 : i32
    %c0_i32_0 = arith.constant 0 : i32
    %c0_i32_1 = arith.constant 0 : i32
    return %c0_i32, %c0_i32_0 : i32, i32
  }
  func.func @transform_3(%arg0: i32) -> (i32, i32) {
    %c0_i32 = arith.constant 0 : i32
    %c0_i32_0 = arith.constant 0 : i32
    return %arg0, %c0_i32 : i32, i32
  }
}

module attributes {stable_mosaic.version = 11 : i64} {
  func.func @_node_linear_kernel(%arg0: i32, %arg1: i32, %arg2: memref<128x128xbf16, #tpu.memory_space<vmem>>, %arg3: memref<128x128xbf16, #tpu.memory_space<vmem>>, %arg4: memref<128x128xf32, #tpu.memory_space<vmem>>, %arg5: memref<1x128xf32, #tpu.memory_space<vmem>>, %arg6: memref<128x128xbf16, #tpu.memory_space<vmem>>, %arg7: memref<128x128xf32, #tpu.memory_space<vmem>>) attributes {dimension_semantics = [#tpu.dimension_semantics<parallel>, #tpu.dimension_semantics<arbitrary>], iteration_bounds = array<i64: 1, 1>, scalar_prefetch = 0 : i64, scratch_operands = 1 : i64, tpu.core_type = #tpu.core_type<tc>, window_params = [{transform_indices = @transform_0, window_bounds = array<i64: 128, 128>}, {transform_indices = @transform_1, window_bounds = array<i64: 128, 128>}, {pipeline_mode = #tpu.pipeline_mode<synchronous>, transform_indices = @transform_2, window_bounds = array<i64: 128, 128>}, {pipeline_mode = #tpu.pipeline_mode<synchronous>, transform_indices = @transform_3, window_bounds = array<i64: 1, 128>}, {transform_indices = @transform_4, window_bounds = array<i64: 128, 128>}]} {
    %c0_i32 = arith.constant 0 : i32
    %0 = arith.cmpi eq, %arg1, %c0_i32 : i32
    %1 = arith.extui %0 : i1 to i32
    %c0_i32_0 = arith.constant 0 : i32
    %2 = arith.cmpi ne, %1, %c0_i32_0 : i32
    scf.if %2 {
      %cst_10 = arith.constant 0.000000e+00 : f32
      %14 = vector.broadcast %cst_10 : f32 to vector<128x128xf32>
      %c0_11 = arith.constant 0 : index
      %c0_12 = arith.constant 0 : index
      %15 = vector.load %arg7[%c0_11, %c0_12] : memref<128x128xf32, #tpu.memory_space<vmem>>, vector<128x128xf32>
      tpu.vector_store %arg7[%c0_11, %c0_12], %14 {strides = array<i32>} : memref<128x128xf32, #tpu.memory_space<vmem>>, vector<128x128xf32>,
    } else {
    }
    %c0 = arith.constant 0 : index
    %c0_1 = arith.constant 0 : index
    %3 = vector.load %arg7[%c0, %c0_1] : memref<128x128xf32, #tpu.memory_space<vmem>>, vector<128x128xf32>
    %c0_2 = arith.constant 0 : index
    %c0_3 = arith.constant 0 : index
    %4 = vector.load %arg2[%c0_2, %c0_3] : memref<128x128xbf16, #tpu.memory_space<vmem>>, vector<128x128xbf16>
    %5 = arith.extf %4 : vector<128x128xbf16> to vector<128x128xf32>
    %c0_4 = arith.constant 0 : index
    %c0_5 = arith.constant 0 : index
    %6 = vector.load %arg3[%c0_4, %c0_5] : memref<128x128xbf16, #tpu.memory_space<vmem>>, vector<128x128xbf16>
    %7 = arith.extf %6 : vector<128x128xbf16> to vector<128x128xf32>
    %cst = arith.constant dense<0.000000e+00> : vector<128x128xf32>
    %8 = tpu.matmul %5, %7, %cst {dimension_numbers = #tpu.dot_dimension_numbers<[1], [0], [0], [1], [0, 0, 1, 1], [], []>} : vector<128x128xf32>, vector<128x128xf32>, vector<128x128xf32> -> vector<128x128xf32>
    %9 = arith.addf %3, %8 : vector<128x128xf32>
    %c0_6 = arith.constant 0 : index
    %c0_7 = arith.constant 0 : index
    %10 = vector.load %arg7[%c0_6, %c0_7] : memref<128x128xf32, #tpu.memory_space<vmem>>, vector<128x128xf32>
    tpu.vector_store %arg7[%c0_6, %c0_7], %9 {strides = array<i32>} : memref<128x128xf32, #tpu.memory_space<vmem>>, vector<128x128xf32>,
    %c0_i32_8 = arith.constant 0 : i32
    %11 = arith.cmpi eq, %arg1, %c0_i32_8 : i32
    %12 = arith.extui %11 : i1 to i32
    %c0_i32_9 = arith.constant 0 : i32
    %13 = arith.cmpi ne, %12, %c0_i32_9 : i32
    scf.if %13 {
      %c0_10 = arith.constant 0 : index
      %c0_11 = arith.constant 0 : index
      %14 = vector.load %arg7[%c0_10, %c0_11] : memref<128x128xf32, #tpu.memory_space<vmem>>, vector<128x128xf32>
      %cst_12 = arith.constant 0.000000e+00 : f32
      %15 = vector.broadcast %cst_12 : f32 to vector<128x128xf32>
      %16 = arith.maximumf %14, %15 : vector<128x128xf32>
      %c0_13 = arith.constant 0 : index
      %c0_14 = arith.constant 0 : index
      %17 = vector.load %arg4[%c0_13, %c0_14] : memref<128x128xf32, #tpu.memory_space<vmem>>, vector<128x128xf32>
      %cst_15 = arith.constant dense<0.000000e+00> : vector<128x128xf32>
      %18 = tpu.matmul %16, %17, %cst_15 {dimension_numbers = #tpu.dot_dimension_numbers<[1], [0], [0], [1], [0, 0, 1, 1], [], []>} : vector<128x128xf32>, vector<128x128xf32>, vector<128x128xf32> -> vector<128x128xf32>
      %c0_16 = arith.constant 0 : index
      %c0_17 = arith.constant 0 : index
      %19 = vector.load %arg5[%c0_16, %c0_17] : memref<1x128xf32, #tpu.memory_space<vmem>>, vector<1x128xf32>
      %20 = vector.broadcast %19 : vector<1x128xf32> to vector<128x128xf32>
      %21 = arith.addf %18, %20 : vector<128x128xf32>
      %22 = arith.truncf %21 : vector<128x128xf32> to vector<128x128xbf16>
      %c0_18 = arith.constant 0 : index
      %c0_19 = arith.constant 0 : index
      %23 = vector.load %arg6[%c0_18, %c0_19] : memref<128x128xbf16, #tpu.memory_space<vmem>>, vector<128x128xbf16>
      tpu.vector_store %arg6[%c0_18, %c0_19], %22 {strides = array<i32>} : memref<128x128xbf16, #tpu.memory_space<vmem>>, vector<128x128xbf16>,
    } else {
    }
    return
  }
  func.func @transform_0(%arg0: i32, %arg1: i32) -> (i32, i32) {
    %c0_i32 = arith.constant 0 : i32
    return %arg0, %arg1 : i32, i32
  }
  func.func @transform_1(%arg0: i32, %arg1: i32) -> (i32, i32) {
    %c0_i32 = arith.constant 0 : i32
    %c0_i32_0 = arith.constant 0 : i32
    return %arg1, %c0_i32 : i32, i32
  }
  func.func @transform_2(%arg0: i32, %arg1: i32) -> (i32, i32) {
    %c0_i32 = arith.constant 0 : i32
    %c0_i32_0 = arith.constant 0 : i32
    %c0_i32_1 = arith.constant 0 : i32
    return %c0_i32, %c0_i32_0 : i32, i32
  }
  func.func @transform_3(%arg0: i32, %arg1: i32) -> (i32, i32) {
    %c0_i32 = arith.constant 0 : i32
    %c0_i32_0 = arith.constant 0 : i32
    %c0_i32_1 = arith.constant 0 : i32
    return %c0_i32, %c0_i32_0 : i32, i32
  }
  func.func @transform_4(%arg0: i32, %arg1: i32) -> (i32, i32) {
    %c0_i32 = arith.constant 0 : i32
    %c0_i32_0 = arith.constant 0 : i32
    return %arg0, %c0_i32 : i32, i32
  }
}

module attributes {stable_mosaic.version = 11 : i64} {
  func.func @_edge_agg_kernel(%arg0: i32, %arg1: i32, %arg2: memref<128x128xbf16, #tpu.memory_space<vmem>>, %arg3: memref<128x128xbf16, #tpu.memory_space<vmem>>, %arg4: memref<128x128xbf16, #tpu.memory_space<vmem>>, %arg5: memref<128x128xf32, #tpu.memory_space<vmem>>) attributes {dimension_semantics = [#tpu.dimension_semantics<parallel>, #tpu.dimension_semantics<arbitrary>], iteration_bounds = array<i64: 1, 1>, scalar_prefetch = 0 : i64, scratch_operands = 1 : i64, tpu.core_type = #tpu.core_type<tc>, window_params = [{transform_indices = @transform_0, window_bounds = array<i64: 128, 128>}, {transform_indices = @transform_1, window_bounds = array<i64: 128, 128>}, {transform_indices = @transform_2, window_bounds = array<i64: 128, 128>}]} {
    %c0_i32 = arith.constant 0 : i32
    %0 = arith.cmpi eq, %arg1, %c0_i32 : i32
    %1 = arith.extui %0 : i1 to i32
    %c0_i32_0 = arith.constant 0 : i32
    %2 = arith.cmpi ne, %1, %c0_i32_0 : i32
    scf.if %2 {
      %cst_10 = arith.constant 0.000000e+00 : f32
      %14 = vector.broadcast %cst_10 : f32 to vector<128x128xf32>
      %c0_11 = arith.constant 0 : index
      %c0_12 = arith.constant 0 : index
      %15 = vector.load %arg5[%c0_11, %c0_12] : memref<128x128xf32, #tpu.memory_space<vmem>>, vector<128x128xf32>
      tpu.vector_store %arg5[%c0_11, %c0_12], %14 {strides = array<i32>} : memref<128x128xf32, #tpu.memory_space<vmem>>, vector<128x128xf32>,
    } else {
    }
    %c0 = arith.constant 0 : index
    %c0_1 = arith.constant 0 : index
    %3 = vector.load %arg5[%c0, %c0_1] : memref<128x128xf32, #tpu.memory_space<vmem>>, vector<128x128xf32>
    %c0_2 = arith.constant 0 : index
    %c0_3 = arith.constant 0 : index
    %4 = vector.load %arg2[%c0_2, %c0_3] : memref<128x128xbf16, #tpu.memory_space<vmem>>, vector<128x128xbf16>
    %5 = arith.extf %4 : vector<128x128xbf16> to vector<128x128xf32>
    %c0_4 = arith.constant 0 : index
    %c0_5 = arith.constant 0 : index
    %6 = vector.load %arg3[%c0_4, %c0_5] : memref<128x128xbf16, #tpu.memory_space<vmem>>, vector<128x128xbf16>
    %7 = arith.extf %6 : vector<128x128xbf16> to vector<128x128xf32>
    %cst = arith.constant dense<0.000000e+00> : vector<128x128xf32>
    %8 = tpu.matmul %5, %7, %cst {dimension_numbers = #tpu.dot_dimension_numbers<[0], [0], [1], [1], [0, 1, 1, 1], [], []>} : vector<128x128xf32>, vector<128x128xf32>, vector<128x128xf32> -> vector<128x128xf32>
    %9 = arith.addf %3, %8 : vector<128x128xf32>
    %c0_6 = arith.constant 0 : index
    %c0_7 = arith.constant 0 : index
    %10 = vector.load %arg5[%c0_6, %c0_7] : memref<128x128xf32, #tpu.memory_space<vmem>>, vector<128x128xf32>
    tpu.vector_store %arg5[%c0_6, %c0_7], %9 {strides = array<i32>} : memref<128x128xf32, #tpu.memory_space<vmem>>, vector<128x128xf32>,
    %c0_i32_8 = arith.constant 0 : i32
    %11 = arith.cmpi eq, %arg1, %c0_i32_8 : i32
    %12 = arith.extui %11 : i1 to i32
    %c0_i32_9 = arith.constant 0 : i32
    %13 = arith.cmpi ne, %12, %c0_i32_9 : i32
    scf.if %13 {
      %c0_10 = arith.constant 0 : index
      %c0_11 = arith.constant 0 : index
      %14 = vector.load %arg5[%c0_10, %c0_11] : memref<128x128xf32, #tpu.memory_space<vmem>>, vector<128x128xf32>
      %15 = arith.truncf %14 : vector<128x128xf32> to vector<128x128xbf16>
      %c0_12 = arith.constant 0 : index
      %c0_13 = arith.constant 0 : index
      %16 = vector.load %arg4[%c0_12, %c0_13] : memref<128x128xbf16, #tpu.memory_space<vmem>>, vector<128x128xbf16>
      tpu.vector_store %arg4[%c0_12, %c0_13], %15 {strides = array<i32>} : memref<128x128xbf16, #tpu.memory_space<vmem>>, vector<128x128xbf16>,
    } else {
    }
    return
  }
  func.func @transform_0(%arg0: i32, %arg1: i32) -> (i32, i32) {
    %c0_i32 = arith.constant 0 : i32
    return %arg1, %arg0 : i32, i32
  }
  func.func @transform_1(%arg0: i32, %arg1: i32) -> (i32, i32) {
    %c0_i32 = arith.constant 0 : i32
    %c0_i32_0 = arith.constant 0 : i32
    return %arg1, %c0_i32 : i32, i32
  }
  func.func @transform_2(%arg0: i32, %arg1: i32) -> (i32, i32) {
    %c0_i32 = arith.constant 0 : i32
    %c0_i32_0 = arith.constant 0 : i32
    return %arg0, %c0_i32 : i32, i32
  }
}

module attributes {stable_mosaic.version = 11 : i64} {
  func.func @_node_proj_kernel(%arg0: i32, %arg1: i32, %arg2: memref<128x128xbf16, #tpu.memory_space<vmem>>, %arg3: memref<128x128xbf16, #tpu.memory_space<vmem>>, %arg4: memref<128x128xf32, #tpu.memory_space<vmem>>, %arg5: memref<1x128xf32, #tpu.memory_space<vmem>>, %arg6: memref<128x128xf32, #tpu.memory_space<vmem>>, %arg7: memref<1x128xf32, #tpu.memory_space<vmem>>, %arg8: memref<128x128xf32, #tpu.memory_space<vmem>>, %arg9: memref<128x128xf32, #tpu.memory_space<vmem>>, %arg10: memref<128x128xf32, #tpu.memory_space<vmem>>) attributes {dimension_semantics = [#tpu.dimension_semantics<parallel>, #tpu.dimension_semantics<arbitrary>], iteration_bounds = array<i64: 1, 1>, scalar_prefetch = 0 : i64, scratch_operands = 1 : i64, tpu.core_type = #tpu.core_type<tc>, window_params = [{transform_indices = @transform_0, window_bounds = array<i64: 128, 128>}, {transform_indices = @transform_1, window_bounds = array<i64: 128, 128>}, {pipeline_mode = #tpu.pipeline_mode<synchronous>, transform_indices = @transform_2, window_bounds = array<i64: 128, 128>}, {pipeline_mode = #tpu.pipeline_mode<synchronous>, transform_indices = @transform_3, window_bounds = array<i64: 1, 128>}, {pipeline_mode = #tpu.pipeline_mode<synchronous>, transform_indices = @transform_4, window_bounds = array<i64: 128, 128>}, {pipeline_mode = #tpu.pipeline_mode<synchronous>, transform_indices = @transform_5, window_bounds = array<i64: 1, 128>}, {transform_indices = @transform_6, window_bounds = array<i64: 128, 128>}, {transform_indices = @transform_7, window_bounds = array<i64: 128, 128>}]} {
    %c0_i32 = arith.constant 0 : i32
    %0 = arith.cmpi eq, %arg1, %c0_i32 : i32
    %1 = arith.extui %0 : i1 to i32
    %c0_i32_0 = arith.constant 0 : i32
    %2 = arith.cmpi ne, %1, %c0_i32_0 : i32
    scf.if %2 {
      %cst_10 = arith.constant 0.000000e+00 : f32
      %14 = vector.broadcast %cst_10 : f32 to vector<128x128xf32>
      %c0_11 = arith.constant 0 : index
      %c0_12 = arith.constant 0 : index
      %15 = vector.load %arg10[%c0_11, %c0_12] : memref<128x128xf32, #tpu.memory_space<vmem>>, vector<128x128xf32>
      tpu.vector_store %arg10[%c0_11, %c0_12], %14 {strides = array<i32>} : memref<128x128xf32, #tpu.memory_space<vmem>>, vector<128x128xf32>,
    } else {
    }
    %c0 = arith.constant 0 : index
    %c0_1 = arith.constant 0 : index
    %3 = vector.load %arg10[%c0, %c0_1] : memref<128x128xf32, #tpu.memory_space<vmem>>, vector<128x128xf32>
    %c0_2 = arith.constant 0 : index
    %c0_3 = arith.constant 0 : index
    %4 = vector.load %arg2[%c0_2, %c0_3] : memref<128x128xbf16, #tpu.memory_space<vmem>>, vector<128x128xbf16>
    %5 = arith.extf %4 : vector<128x128xbf16> to vector<128x128xf32>
    %c0_4 = arith.constant 0 : index
    %c0_5 = arith.constant 0 : index
    %6 = vector.load %arg3[%c0_4, %c0_5] : memref<128x128xbf16, #tpu.memory_space<vmem>>, vector<128x128xbf16>
    %7 = arith.extf %6 : vector<128x128xbf16> to vector<128x128xf32>
    %cst = arith.constant dense<0.000000e+00> : vector<128x128xf32>
    %8 = tpu.matmul %5, %7, %cst {dimension_numbers = #tpu.dot_dimension_numbers<[1], [0], [0], [1], [0, 0, 1, 1], [], []>} : vector<128x128xf32>, vector<128x128xf32>, vector<128x128xf32> -> vector<128x128xf32>
    %9 = arith.addf %3, %8 : vector<128x128xf32>
    %c0_6 = arith.constant 0 : index
    %c0_7 = arith.constant 0 : index
    %10 = vector.load %arg10[%c0_6, %c0_7] : memref<128x128xf32, #tpu.memory_space<vmem>>, vector<128x128xf32>
    tpu.vector_store %arg10[%c0_6, %c0_7], %9 {strides = array<i32>} : memref<128x128xf32, #tpu.memory_space<vmem>>, vector<128x128xf32>,
    %c0_i32_8 = arith.constant 0 : i32
    %11 = arith.cmpi eq, %arg1, %c0_i32_8 : i32
    %12 = arith.extui %11 : i1 to i32
    %c0_i32_9 = arith.constant 0 : i32
    %13 = arith.cmpi ne, %12, %c0_i32_9 : i32
    scf.if %13 {
      %c0_10 = arith.constant 0 : index
      %c0_11 = arith.constant 0 : index
      %14 = vector.load %arg10[%c0_10, %c0_11] : memref<128x128xf32, #tpu.memory_space<vmem>>, vector<128x128xf32>
      %c0_12 = arith.constant 0 : index
      %c0_13 = arith.constant 0 : index
      %15 = vector.load %arg8[%c0_12, %c0_13] : memref<128x128xf32, #tpu.memory_space<vmem>>, vector<128x128xf32>
      tpu.vector_store %arg8[%c0_12, %c0_13], %14 {strides = array<i32>} : memref<128x128xf32, #tpu.memory_space<vmem>>, vector<128x128xf32>,
      %c0_14 = arith.constant 0 : index
      %c0_15 = arith.constant 0 : index
      %16 = vector.load %arg4[%c0_14, %c0_15] : memref<128x128xf32, #tpu.memory_space<vmem>>, vector<128x128xf32>
      %cst_16 = arith.constant dense<0.000000e+00> : vector<128x128xf32>
      %17 = tpu.matmul %14, %16, %cst_16 {dimension_numbers = #tpu.dot_dimension_numbers<[1], [0], [0], [1], [0, 0, 1, 1], [], []>} : vector<128x128xf32>, vector<128x128xf32>, vector<128x128xf32> -> vector<128x128xf32>
      %c0_17 = arith.constant 0 : index
      %c0_18 = arith.constant 0 : index
      %18 = vector.load %arg5[%c0_17, %c0_18] : memref<1x128xf32, #tpu.memory_space<vmem>>, vector<1x128xf32>
      %19 = vector.broadcast %18 : vector<1x128xf32> to vector<128x128xf32>
      %20 = arith.addf %17, %19 : vector<128x128xf32>
      %cst_19 = arith.constant 0.000000e+00 : f32
      %21 = vector.broadcast %cst_19 : f32 to vector<128x128xf32>
      %22 = arith.maximumf %20, %21 : vector<128x128xf32>
      %c0_20 = arith.constant 0 : index
      %c0_21 = arith.constant 0 : index
      %23 = vector.load %arg6[%c0_20, %c0_21] : memref<128x128xf32, #tpu.memory_space<vmem>>, vector<128x128xf32>
      %cst_22 = arith.constant dense<0.000000e+00> : vector<128x128xf32>
      %24 = tpu.matmul %22, %23, %cst_22 {dimension_numbers = #tpu.dot_dimension_numbers<[1], [0], [0], [1], [0, 0, 1, 1], [], []>} : vector<128x128xf32>, vector<128x128xf32>, vector<128x128xf32> -> vector<128x128xf32>
      %c0_23 = arith.constant 0 : index
      %c0_24 = arith.constant 0 : index
      %25 = vector.load %arg7[%c0_23, %c0_24] : memref<1x128xf32, #tpu.memory_space<vmem>>, vector<1x128xf32>
      %26 = vector.broadcast %25 : vector<1x128xf32> to vector<128x128xf32>
      %27 = arith.addf %24, %26 : vector<128x128xf32>
      %c0_25 = arith.constant 0 : index
      %c0_26 = arith.constant 0 : index
      %28 = vector.load %arg9[%c0_25, %c0_26] : memref<128x128xf32, #tpu.memory_space<vmem>>, vector<128x128xf32>
      tpu.vector_store %arg9[%c0_25, %c0_26], %27 {strides = array<i32>} : memref<128x128xf32, #tpu.memory_space<vmem>>, vector<128x128xf32>,
    } else {
    }
    return
  }
  func.func @transform_0(%arg0: i32, %arg1: i32) -> (i32, i32) {
    %c0_i32 = arith.constant 0 : i32
    return %arg0, %arg1 : i32, i32
  }
  func.func @transform_1(%arg0: i32, %arg1: i32) -> (i32, i32) {
    %c0_i32 = arith.constant 0 : i32
    %c0_i32_0 = arith.constant 0 : i32
    return %arg1, %c0_i32 : i32, i32
  }
  func.func @transform_2(%arg0: i32, %arg1: i32) -> (i32, i32) {
    %c0_i32 = arith.constant 0 : i32
    %c0_i32_0 = arith.constant 0 : i32
    %c0_i32_1 = arith.constant 0 : i32
    return %c0_i32, %c0_i32_0 : i32, i32
  }
  func.func @transform_3(%arg0: i32, %arg1: i32) -> (i32, i32) {
    %c0_i32 = arith.constant 0 : i32
    %c0_i32_0 = arith.constant 0 : i32
    %c0_i32_1 = arith.constant 0 : i32
    return %c0_i32, %c0_i32_0 : i32, i32
  }
  func.func @transform_4(%arg0: i32, %arg1: i32) -> (i32, i32) {
    %c0_i32 = arith.constant 0 : i32
    %c0_i32_0 = arith.constant 0 : i32
    %c0_i32_1 = arith.constant 0 : i32
    return %c0_i32, %c0_i32_0 : i32, i32
  }
  func.func @transform_5(%arg0: i32, %arg1: i32) -> (i32, i32) {
    %c0_i32 = arith.constant 0 : i32
    %c0_i32_0 = arith.constant 0 : i32
    %c0_i32_1 = arith.constant 0 : i32
    return %c0_i32, %c0_i32_0 : i32, i32
  }
  func.func @transform_6(%arg0: i32, %arg1: i32) -> (i32, i32) {
    %c0_i32 = arith.constant 0 : i32
    %c0_i32_0 = arith.constant 0 : i32
    return %arg0, %c0_i32 : i32, i32
  }
  func.func @transform_7(%arg0: i32, %arg1: i32) -> (i32, i32) {
    %c0_i32 = arith.constant 0 : i32
    %c0_i32_0 = arith.constant 0 : i32
    return %arg0, %c0_i32 : i32, i32
  }
}

</mosaic_0001>

<bundles_post_ra>
// kernel: _forward.9
= control target key start
LH: loop header
LB: loop body
LE: loop exit
PB: predicated region body
PF: predicated region fallthrough
CT: control target
= control target key end

     0   :  { %s1397_s1 = inlined_call_operand.vmem [shape: bf16[128,128], index: 1, kind: input, shape index: {}]   ;;  %s1398_s0 = inlined_call_operand.vmem [shape: bf16[128,128], index: 0, kind: input, shape index: {}]   ;;  %s1399_s2 = inlined_call_operand.vmem [shape: f32[128,128], index: 2, kind: input, shape index: {}]   ;;  %s1400_s4 = inlined_call_operand.vmem [shape: f32[128,128], index: 4, kind: input, shape index: {}]   ;;  %s1401_s6 = inlined_call_operand.vmem [shape: f32[128,128], index: 6, kind: output, shape index: {0}]   ;;  %s1402_s3 = inlined_call_operand.vmem [shape: f32[1,128], index: 3, kind: input, shape index: {}]   ;;  %s1403_s5 = inlined_call_operand.vmem [shape: f32[1,128], index: 5, kind: input, shape index: {}]   ;;  %s1404_s7 = inlined_call_operand.vmem [shape: f32[128,128], index: 7, kind: output, shape index: {1}]  }
   0x1   :  { %v792_v0 = vld [vmem:[%s1397_s1 + $0x38] sm:$0xff]   ;;  %v791_v1 = vld [vmem:[%s1397_s1 + $0x30] sm:$0xff]   ;;  %v1138_v4 = vld [vmem:[%s1398_s0] sm:$0xff]  }
   0x2   :  { %v777_v2 = vunpack.c.l.bf16 %v792_v0  ;;  %v778_v3 = vunpack.c.h.bf16 %v792_v0  ;;  %v774_v5 = vunpack.c.h.bf16 %v791_v1  ;;  %v790_v6 = vld [vmem:[%s1397_s1 + $0x28] sm:$0xff]   ;;  %v773_v7 = vunpack.c.l.bf16 %v791_v1  ;;  %v352_v9 = vld [vmem:[%s1399_s2 + $0x78] sm:$0xff]  ;;  %v351_v10 = vld [vmem:[%s1399_s2 + $0x70] sm:$0xff] }
   0x3   :  { %v717_v8 = vunpack.c.l.bf16 %v1138_v4  ;;  %945 = vmatprep.subr.mxu1 %v352_v9  ;;  %v770_v11 = vunpack.c.h.bf16 %v790_v6  ;;  %v789_v12 = vld [vmem:[%s1397_s1 + $0x20] sm:$0xff]   ;;  %v350_v13 = vld [vmem:[%s1399_s2 + $0x68] sm:$0xff]  ;;  %v769_v14 = vunpack.c.l.bf16 %v790_v6  ;;  %v788_v17 = vld [vmem:[%s1397_s1 + $0x18] sm:$0xff]   ;;  %v718_v41 = vunpack.c.h.bf16 %v1138_v4 }
   0x4   :  { %889 = vmatprep.subr.mxu0 %v778_v3  ;;  %946 = vmatpush3.msra.mxu1 %v352_v9  ;;  %v349_v15 = vld [vmem:[%s1399_s2 + $0x60] sm:$0xff]  ;;  %v766_v16 = vunpack.c.h.bf16 %v789_v12  ;;  %v348_v18 = vld [vmem:[%s1399_s2 + $0x58] sm:$0xff]  ;;  %v765_v19 = vunpack.c.l.bf16 %v789_v12  ;;  %v347_v20 = vld [vmem:[%s1399_s2 + $0x50] sm:$0xff]  ;;  %v762_v21 = vunpack.c.h.bf16 %v788_v17  ;;  %v761_v24 = vunpack.c.l.bf16 %v788_v17 }
   0x5   :  { %890 = vmatpush3.msra.mxu0 %v778_v3  ;;  %921 = vmatprep.mubr.f32.mxu0 %v717_v8  ;;  %v787_v22 = vld [vmem:[%s1397_s1 + $0x10] sm:$0xff]   ;;  %v346_v23 = vld [vmem:[%s1399_s2 + $0x48] sm:$0xff]  ;;  %v345_v25 = vld [vmem:[%s1399_s2 + $0x40] sm:$0xff] }
   0x6   :  { %891 = vmatprep.subr.mxu0 %v777_v2  ;;  %947 = vmatprep.subr.mxu1 %v351_v10  ;;  %v758_v26 = vunpack.c.h.bf16 %v787_v22  ;;  %v786_v27 = vld [vmem:[%s1397_s1 + $0x8] sm:$0xff]   ;;  %v344_v28 = vld [vmem:[%s1399_s2 + $0x38] sm:$0xff]  ;;  %v757_v29 = vunpack.c.l.bf16 %v787_v22  ;;  %v343_v30 = vld [vmem:[%s1399_s2 + $0x30] sm:$0xff] }
   0x7   :  { %892 = vmatpush3.msra.mxu0 %v777_v2  ;;  %948 = vmatpush3.msra.mxu1 %v351_v10  ;;  %v754_v31 = vunpack.c.h.bf16 %v786_v27  ;;  %v748_v32 = vld [vmem:[%s1397_s1] sm:$0xff]   ;;  %v342_v33 = vld [vmem:[%s1399_s2 + $0x28] sm:$0xff]  ;;  %v753_v34 = vunpack.c.l.bf16 %v786_v27  ;;  %v340_v37 = vld [vmem:[%s1399_s2 + $0x18] sm:$0xff] }
   0x8   :  { %893 = vmatprep.subr.mxu0 %v774_v5  ;;  %949 = vmatprep.subr.mxu1 %v350_v13  ;;  %v341_v35 = vld [vmem:[%s1399_s2 + $0x20] sm:$0xff]  ;;  %v750_v36 = vunpack.c.h.bf16 %v748_v32  ;;  %v749_v38 = vunpack.c.l.bf16 %v748_v32  ;;  %v779_v39 = vld [vmem:[%s1398_s0 + $0x8] sm:$0xff]   ;;  %v339_v40 = vld [vmem:[%s1399_s2 + $0x10] sm:$0xff] }
   0x9   :  { %894 = vmatpush3.msra.mxu0 %v774_v5  ;;  %950 = vmatpush3.msra.mxu1 %v350_v13  ;;  %v721_v42 = vunpack.c.l.bf16 %v779_v39  ;;  %v780_v43 = vld [vmem:[%s1398_s0 + $0x10] sm:$0xff]   ;;  %v722_v44 = vunpack.c.h.bf16 %v779_v39  ;;  %v781_v46 = vld [vmem:[%s1398_s0 + $0x18] sm:$0xff]   ;;  %v782_v49 = vld [vmem:[%s1398_s0 + $0x20] sm:$0xff]  }
   0xa   :  { %895 = vmatprep.subr.mxu0 %v773_v7  ;;  %951 = vmatprep.subr.mxu1 %v349_v15  ;;  %v725_v45 = vunpack.c.l.bf16 %v780_v43  ;;  %v726_v47 = vunpack.c.h.bf16 %v780_v43  ;;  %v729_v48 = vunpack.c.l.bf16 %v781_v46  ;;  %v730_v50 = vunpack.c.h.bf16 %v781_v46  ;;  %v783_v52 = vld [vmem:[%s1398_s0 + $0x28] sm:$0xff]   ;;  %v784_v55 = vld [vmem:[%s1398_s0 + $0x30] sm:$0xff]   ;;  %v785_v58 = vld [vmem:[%s1398_s0 + $0x38] sm:$0xff]  }
   0xb   :  { %896 = vmatpush3.msra.mxu0 %v773_v7  ;;  %952 = vmatpush3.msra.mxu1 %v349_v15  ;;  %v733_v51 = vunpack.c.l.bf16 %v782_v49  ;;  %v734_v53 = vunpack.c.h.bf16 %v782_v49  ;;  %v737_v54 = vunpack.c.l.bf16 %v783_v52  ;;  %v738_v56 = vunpack.c.h.bf16 %v783_v52  ;;  %v338_v62 = vld [vmem:[%s1399_s2 + $0x8] sm:$0xff]  ;;  %v337_v63 = vld [vmem:[%s1399_s2] sm:$0xff]  ;;  %v536_v0 = vld [vmem:[%s1400_s4 + $0x78] sm:$0xff] }
   0xc   :  { %897 = vmatprep.subr.mxu0 %v770_v11  ;;  %953 = vmatprep.subr.mxu1 %v348_v18  ;;  %v741_v57 = vunpack.c.l.bf16 %v784_v55  ;;  %v742_v59 = vunpack.c.h.bf16 %v784_v55  ;;  %v745_v60 = vunpack.c.l.bf16 %v785_v58  ;;  %v746_v61 = vunpack.c.h.bf16 %v785_v58  ;;  %v535_v1 = vld [vmem:[%s1400_s4 + $0x70] sm:$0xff]  ;;  %v534_v2 = vld [vmem:[%s1400_s4 + $0x68] sm:$0xff]  ;;  %v533_v3 = vld [vmem:[%s1400_s4 + $0x60] sm:$0xff] }
   0xd   :  { %898 = vmatpush3.msra.mxu0 %v770_v11  ;;  %954 = vmatpush3.msra.mxu1 %v348_v18  ;;  %v532_v4 = vld [vmem:[%s1400_s4 + $0x58] sm:$0xff]  ;;  %v531_v5 = vld [vmem:[%s1400_s4 + $0x50] sm:$0xff]  ;;  %v530_v6 = vld [vmem:[%s1400_s4 + $0x48] sm:$0xff] }
   0xe   :  { %899 = vmatprep.subr.mxu0 %v769_v14  ;;  %955 = vmatprep.subr.mxu1 %v347_v20  ;;  %v529_v7 = vld [vmem:[%s1400_s4 + $0x40] sm:$0xff]  ;;  %v528_v8 = vld [vmem:[%s1400_s4 + $0x38] sm:$0xff]  ;;  %v1259_v9 = vld [vmem:[%s1400_s4 + $0x30] sm:$0xff] }
   0xf   :  { %900 = vmatpush3.msra.mxu0 %v769_v14  ;;  %956 = vmatpush3.msra.mxu1 %v347_v20  ;;  %v1264_v10 = vld [vmem:[%s1400_s4 + $0x28] sm:$0xff]  ;;  %v1271_v11 = vld [vmem:[%s1400_s4 + $0x20] sm:$0xff] }
  0x10   :  { %901 = vmatprep.subr.mxu0 %v766_v16  ;;  %957 = vmatprep.subr.mxu1 %v346_v23  ;;  %v713_v32 = vld [vmem:[%s1402_s3] ss:$0 sm:$0xff] }
  0x11   :  { %902 = vmatpush3.msra.mxu0 %v766_v16  ;;  %958 = vmatpush3.msra.mxu1 %v346_v23 }
  0x12   :  { %903 = vmatprep.subr.mxu0 %v765_v19  ;;  %959 = vmatprep.subr.mxu1 %v345_v25 }
  0x13   :  { %904 = vmatpush3.msra.mxu0 %v765_v19  ;;  %960 = vmatpush3.msra.mxu1 %v345_v25 }
  0x14   :  { %905 = vmatprep.subr.mxu0 %v762_v21  ;;  %961 = vmatprep.subr.mxu1 %v344_v28 }
  0x15   :  { %906 = vmatpush3.msra.mxu0 %v762_v21  ;;  %962 = vmatpush3.msra.mxu1 %v344_v28  ;;  %v524_v28 = vld [vmem:[%s1400_s4 + $0x18] sm:$0xff] }
  0x16   :  { %907 = vmatprep.subr.mxu0 %v761_v24  ;;  %963 = vmatprep.subr.mxu1 %v343_v30 }
  0x17   :  { %908 = vmatpush3.msra.mxu0 %v761_v24  ;;  %964 = vmatpush3.msra.mxu1 %v343_v30  ;;  %v522_v30 = vld [vmem:[%s1400_s4 + $0x8] sm:$0xff] }
  0x18   :  { %909 = vmatprep.subr.mxu0 %v758_v26  ;;  %965 = vmatprep.subr.mxu1 %v342_v33 }
  0x19   :  { %910 = vmatpush3.msra.mxu0 %v758_v26  ;;  %966 = vmatpush3.msra.mxu1 %v342_v33 }
  0x1a   :  { %911 = vmatprep.subr.mxu0 %v757_v29  ;;  %967 = vmatprep.subr.mxu1 %v341_v35 }
  0x1b   :  { %912 = vmatpush3.msra.mxu0 %v757_v29  ;;  %968 = vmatpush3.msra.mxu1 %v341_v35  ;;  %v523_v29 = vld [vmem:[%s1400_s4 + $0x10] sm:$0xff] }
  0x1c   :  { %913 = vmatprep.subr.mxu0 %v754_v31  ;;  %969 = vmatprep.subr.mxu1 %v340_v37 }
  0x1d   :  { %914 = vmatpush3.msra.mxu0 %v754_v31  ;;  %970 = vmatpush3.msra.mxu1 %v340_v37  ;;  %v521_v31 = vld [vmem:[%s1400_s4] sm:$0xff] }
  0x1e   :  { %915 = vmatprep.subr.mxu0 %v753_v34  ;;  %971 = vmatprep.subr.mxu1 %v339_v40 }
  0x1f   :  { %916 = vmatpush3.msra.mxu0 %v753_v34  ;;  %972 = vmatpush3.msra.mxu1 %v339_v40 }
  0x20   :  { %917 = vmatprep.subr.mxu0 %v750_v36  ;;  %973 = vmatprep.subr.mxu1 %v338_v62 }
  0x21   :  { %918 = vmatpush3.msra.mxu0 %v750_v36  ;;  %974 = vmatpush3.msra.mxu1 %v338_v62 }
  0x22   :  { %919 = vmatprep.subr.mxu0 %v749_v38  ;;  %975 = vmatprep.subr.mxu1 %v337_v63 }
  0x23   :  { %920 = vmatpush3.msra.mxu0 %v749_v38  ;;  %976 = vmatpush3.msra.mxu1 %v337_v63 }
  0x24   :  { %922 = vmatmul.mubr.f32.vlgmr.msra.gmra.mxu0 %v718_v41  ;;  %1001 = vmatprep.subr.mxu0 %v536_v0 }
  0x25   :  { %924 = vmatprep.mubr.f32.mxu0 %v721_v42  ;;  %1057 = vmatprep.subr.mxu1 %v536_v0 }
  0x26   :  { %1002 = vmatpush3.msra.mxu0 %v536_v0 }
  0x27   :  { %1003 = vmatprep.subr.mxu0 %v535_v1 }
  0x28   :  { %925 = vmatmul.mubr.f32.gmra.mxu0 %v722_v44 }
  0x29   :  { %927 = vmatprep.mubr.f32.mxu0 %v725_v45  ;;  %1004 = vmatpush3.msra.mxu0 %v535_v1 }
  0x2a   :  { %1005 = vmatprep.subr.mxu0 %v534_v2 }
  0x2b   :  { %1006 = vmatpush3.msra.mxu0 %v534_v2 }
  0x2c   :  { %928 = vmatmul.mubr.f32.gmra.mxu0 %v726_v47  ;;  %1007 = vmatprep.subr.mxu0 %v533_v3 }
  0x2d   :  { %930 = vmatprep.mubr.f32.mxu0 %v729_v48  ;;  %1008 = vmatpush3.msra.mxu0 %v533_v3 }
  0x2e   :  { %1009 = vmatprep.subr.mxu0 %v532_v4 }
  0x2f   :  { %1010 = vmatpush3.msra.mxu0 %v532_v4 }
  0x30   :  { %931 = vmatmul.mubr.f32.gmra.mxu0 %v730_v50  ;;  %1011 = vmatprep.subr.mxu0 %v531_v5 }
  0x31   :  { %933 = vmatprep.mubr.f32.mxu0 %v733_v51  ;;  %1012 = vmatpush3.msra.mxu0 %v531_v5 }
  0x32   :  { %1013 = vmatprep.subr.mxu0 %v530_v6 }
  0x33   :  { %1014 = vmatpush3.msra.mxu0 %v530_v6 }
  0x34   :  { %934 = vmatmul.mubr.f32.gmra.mxu0 %v734_v53  ;;  %1015 = vmatprep.subr.mxu0 %v529_v7 }
  0x35   :  { %936 = vmatprep.mubr.f32.mxu0 %v737_v54  ;;  %1016 = vmatpush3.msra.mxu0 %v529_v7 }
  0x36   :  { %1017 = vmatprep.subr.mxu0 %v528_v8 }
  0x37   :  { %1018 = vmatpush3.msra.mxu0 %v528_v8 }
  0x38   :  { %937 = vmatmul.mubr.f32.gmra.mxu0 %v738_v56  ;;  %1019 = vmatprep.subr.mxu0 %v1259_v9 }
  0x39   :  { %939 = vmatprep.mubr.f32.mxu0 %v741_v57  ;;  %1020 = vmatpush3.msra.mxu0 %v1259_v9 }
  0x3a   :  { %1021 = vmatprep.subr.mxu0 %v1264_v10 }
  0x3b   :  { %1022 = vmatpush3.msra.mxu0 %v1264_v10 }
  0x3c   :  { %940 = vmatmul.mubr.f32.gmra.mxu0 %v742_v59  ;;  %1023 = vmatprep.subr.mxu0 %v1271_v11 }
  0x3d   :  { %942 = vmatprep.mubr.f32.mxu0 %v745_v60  ;;  %1024 = vmatpush3.msra.mxu0 %v1271_v11 }
  0x3e   :  { %1025 = vmatprep.subr.mxu0 %v524_v28 }
  0x3f   :  { %1026 = vmatpush3.msra.mxu0 %v524_v28 }
  0x40   :  { %943 = vmatmul.mubr.f32.gmra.mxu0 %v746_v61  ;;  %1027 = vmatprep.subr.mxu0 %v523_v29 }
  0x41   :  { %1028 = vmatpush3.msra.mxu0 %v523_v29 }
  0x42   :  { %1029 = vmatprep.subr.mxu0 %v522_v30 }
  0x43   :  { %1030 = vmatpush3.msra.mxu0 %v522_v30 }
  0x44   :  { %1031 = vmatprep.subr.mxu0 %v521_v31 }
  0x45   :  { %1032 = vmatpush3.msra.mxu0 %v521_v31 }
  0xe4   :  { %v923_v12 = vpop.f32.mrf.mxu0 }
  0xe5   :  { %322 = vst [vmem:[%s1401_s6 + $0x8] sm:$0xff] %v923_v12 }
  0xe6   :  { %v191_v13 = vpop.f32.mrf.mxu0 }
  0xe7   :  { %321 = vst [vmem:[%s1401_s6] sm:$0xff] %v191_v13  ;;  %977 = vmatprep.mubr.f32.mxu1 %v191_v13 }
  0xe8   :  { %v926_v14 = vpop.f32.mrf.mxu0  ;;  %978 = vmatmul.mubr.f32.vlgmr.msra.gmra.mxu1 %v923_v12 }
  0xe9   :  { %324 = vst [vmem:[%s1401_s6 + $0x18] sm:$0xff] %v926_v14  ;;  %1073 = vmatpush3.msra.mxu1 %v536_v0 }
  0xea   :  { %v201_v15 = vpop.f32.mrf.mxu0  ;;  %1058 = vmatprep.subr.mxu1 %v535_v1 }
  0xeb   :  { %323 = vst [vmem:[%s1401_s6 + $0x10] sm:$0xff] %v201_v15  ;;  %980 = vmatprep.mubr.f32.mxu1 %v201_v15  ;;  %1074 = vmatpush3.msra.mxu1 %v535_v1 }
  0xec   :  { %v929_v16 = vpop.f32.mrf.mxu0  ;;  %981 = vmatmul.mubr.f32.gmra.mxu1 %v926_v14  ;;  %1059 = vmatprep.subr.mxu1 %v534_v2 }
  0xed   :  { %326 = vst [vmem:[%s1401_s6 + $0x28] sm:$0xff] %v929_v16  ;;  %1075 = vmatpush3.msra.mxu1 %v534_v2 }
  0xee   :  { %v211_v17 = vpop.f32.mrf.mxu0  ;;  %1060 = vmatprep.subr.mxu1 %v533_v3 }
  0xef   :  { %325 = vst [vmem:[%s1401_s6 + $0x20] sm:$0xff] %v211_v17  ;;  %983 = vmatprep.mubr.f32.mxu1 %v211_v17  ;;  %1076 = vmatpush3.msra.mxu1 %v533_v3  ;;  %v714_v17 = vld [vmem:[%s1403_s5] ss:$0 sm:$0xff] }
  0xf0   :  { %v932_v18 = vpop.f32.mrf.mxu0  ;;  %984 = vmatmul.mubr.f32.gmra.mxu1 %v929_v16  ;;  %1061 = vmatprep.subr.mxu1 %v532_v4 }
  0xf1   :  { %328 = vst [vmem:[%s1401_s6 + $0x38] sm:$0xff] %v932_v18  ;;  %1077 = vmatpush3.msra.mxu1 %v532_v4 }
  0xf2   :  { %v221_v19 = vpop.f32.mrf.mxu0  ;;  %1062 = vmatprep.subr.mxu1 %v531_v5 }
  0xf3   :  { %327 = vst [vmem:[%s1401_s6 + $0x30] sm:$0xff] %v221_v19  ;;  %986 = vmatprep.mubr.f32.mxu1 %v221_v19  ;;  %1078 = vmatpush3.msra.mxu1 %v531_v5 }
  0xf4   :  { %v935_v20 = vpop.f32.mrf.mxu0  ;;  %987 = vmatmul.mubr.f32.gmra.mxu1 %v932_v18  ;;  %1063 = vmatprep.subr.mxu1 %v530_v6 }
  0xf5   :  { %330 = vst [vmem:[%s1401_s6 + $0x48] sm:$0xff] %v935_v20  ;;  %1079 = vmatpush3.msra.mxu1 %v530_v6 }
  0xf6   :  { %v231_v21 = vpop.f32.mrf.mxu0  ;;  %1064 = vmatprep.subr.mxu1 %v529_v7 }
  0xf7   :  { %329 = vst [vmem:[%s1401_s6 + $0x40] sm:$0xff] %v231_v21  ;;  %989 = vmatprep.mubr.f32.mxu1 %v231_v21  ;;  %1080 = vmatpush3.msra.mxu1 %v529_v7 }
  0xf8   :  { %v938_v22 = vpop.f32.mrf.mxu0  ;;  %990 = vmatmul.mubr.f32.gmra.mxu1 %v935_v20  ;;  %1065 = vmatprep.subr.mxu1 %v528_v8 }
  0xf9   :  { %332 = vst [vmem:[%s1401_s6 + $0x58] sm:$0xff] %v938_v22  ;;  %1081 = vmatpush3.msra.mxu1 %v528_v8 }
  0xfa   :  { %v241_v23 = vpop.f32.mrf.mxu0  ;;  %1066 = vmatprep.subr.mxu1 %v1259_v9 }
  0xfb   :  { %331 = vst [vmem:[%s1401_s6 + $0x50] sm:$0xff] %v241_v23  ;;  %992 = vmatprep.mubr.f32.mxu1 %v241_v23  ;;  %1082 = vmatpush3.msra.mxu1 %v1259_v9 }
  0xfc   :  { %v941_v24 = vpop.f32.mrf.mxu0  ;;  %993 = vmatmul.mubr.f32.gmra.mxu1 %v938_v22  ;;  %1067 = vmatprep.subr.mxu1 %v1264_v10 }
  0xfd   :  { %334 = vst [vmem:[%s1401_s6 + $0x68] sm:$0xff] %v941_v24  ;;  %1083 = vmatpush3.msra.mxu1 %v1264_v10 }
  0xfe   :  { %v251_v25 = vpop.f32.mrf.mxu0  ;;  %1068 = vmatprep.subr.mxu1 %v1271_v11 }
  0xff   :  { %333 = vst [vmem:[%s1401_s6 + $0x60] sm:$0xff] %v251_v25  ;;  %995 = vmatprep.mubr.f32.mxu1 %v251_v25  ;;  %1084 = vmatpush3.msra.mxu1 %v1271_v11 }
 0x100   :  { %v944_v26 = vpop.f32.mrf.mxu0  ;;  %996 = vmatmul.mubr.f32.gmra.mxu1 %v941_v24  ;;  %1069 = vmatprep.subr.mxu1 %v524_v28 }
 0x101   :  { %336 = vst [vmem:[%s1401_s6 + $0x78] sm:$0xff] %v944_v26  ;;  %1085 = vmatpush3.msra.mxu1 %v524_v28 }
 0x102   :  { %v261_v27 = vpop.f32.mrf.mxu0  ;;  %1070 = vmatprep.subr.mxu1 %v523_v29 }
 0x103   :  { %335 = vst [vmem:[%s1401_s6 + $0x70] sm:$0xff] %v261_v27  ;;  %998 = vmatprep.mubr.f32.mxu1 %v261_v27  ;;  %1086 = vmatpush3.msra.mxu1 %v523_v29 }
 0x104   :  { %999 = vmatmul.mubr.f32.gmra.mxu1 %v944_v26  ;;  %1071 = vmatprep.subr.mxu1 %v522_v30 }
 0x105   :  { %1087 = vmatpush3.msra.mxu1 %v522_v30 }
 0x106   :  { %1072 = vmatprep.subr.mxu1 %v521_v31 }
 0x107   :  { %1088 = vmatpush3.msra.mxu1 %v521_v31 }
 0x1a8   :  { %v979_v33 = vpop.f32.mrf.mxu1 }
 0x1a9   :  { %v432_v34 = vadd.f32 %v979_v33, %v713_v32 }
 0x1aa   :  { %v426_v35 = vpop.f32.mrf.mxu1 }
 0x1ab   :  { %v427_v36 = vadd.f32 %v713_v32, %v426_v35  ;;  %v506_v39 = vmax.f32 %v432_v34, 0.0 }
 0x1ac   :  { %v982_v37 = vpop.f32.mrf.mxu1 }
 0x1ad   :  { %v505_v38 = vmax.f32 %v427_v36, 0.0  ;;  %v442_v40 = vadd.f32 %v982_v37, %v713_v32 }
 0x1ae   :  { %v436_v41 = vpop.f32.mrf.mxu1 }
 0x1af   :  { %v437_v42 = vadd.f32 %v713_v32, %v436_v41  ;;  %1033 = vmatprep.mubr.f32.mxu0 %v505_v38  ;;  %v508_v45 = vmax.f32 %v442_v40, 0.0 }
 0x1b0   :  { %v985_v43 = vpop.f32.mrf.mxu1  ;;  %1034 = vmatmul.mubr.f32.vlgmr.msra.gmra.mxu0 %v506_v39 }
 0x1b1   :  { %v507_v44 = vmax.f32 %v437_v42, 0.0  ;;  %v452_v46 = vadd.f32 %v985_v43, %v713_v32 }
 0x1b2   :  { %v446_v47 = vpop.f32.mrf.mxu1 }
 0x1b3   :  { %v447_v48 = vadd.f32 %v713_v32, %v446_v47  ;;  %1036 = vmatprep.mubr.f32.mxu0 %v507_v44  ;;  %v510_v51 = vmax.f32 %v452_v46, 0.0 }
 0x1b4   :  { %v988_v49 = vpop.f32.mrf.mxu1  ;;  %1037 = vmatmul.mubr.f32.gmra.mxu0 %v508_v45 }
 0x1b5   :  { %v509_v50 = vmax.f32 %v447_v48, 0.0  ;;  %v462_v52 = vadd.f32 %v988_v49, %v713_v32 }
 0x1b6   :  { %v456_v53 = vpop.f32.mrf.mxu1 }
 0x1b7   :  { %v457_v54 = vadd.f32 %v713_v32, %v456_v53  ;;  %1039 = vmatprep.mubr.f32.mxu0 %v509_v50  ;;  %v512_v57 = vmax.f32 %v462_v52, 0.0 }
 0x1b8   :  { %v991_v55 = vpop.f32.mrf.mxu1  ;;  %1040 = vmatmul.mubr.f32.gmra.mxu0 %v510_v51 }
 0x1b9   :  { %v511_v56 = vmax.f32 %v457_v54, 0.0  ;;  %v472_v58 = vadd.f32 %v991_v55, %v713_v32 }
 0x1ba   :  { %v466_v59 = vpop.f32.mrf.mxu1 }
 0x1bb   :  { %v467_v60 = vadd.f32 %v713_v32, %v466_v59  ;;  %1042 = vmatprep.mubr.f32.mxu0 %v511_v56  ;;  %v514_v63 = vmax.f32 %v472_v58, 0.0 }
 0x1bc   :  { %v994_v61 = vpop.f32.mrf.mxu1  ;;  %1043 = vmatmul.mubr.f32.gmra.mxu0 %v512_v57 }
 0x1bd   :  { %v513_v62 = vmax.f32 %v467_v60, 0.0  ;;  %v482_v0 = vadd.f32 %v994_v61, %v713_v32 }
 0x1be   :  { %v476_v1 = vpop.f32.mrf.mxu1 }
 0x1bf   :  { %v477_v2 = vadd.f32 %v713_v32, %v476_v1  ;;  %1045 = vmatprep.mubr.f32.mxu1 %v513_v62  ;;  %v516_v5 = vmax.f32 %v482_v0, 0.0 }
 0x1c0   :  { %v997_v3 = vpop.f32.mrf.mxu1  ;;  %1046 = vmatmul.mubr.f32.vlgmr.msra.gmra.mxu1 %v514_v63 }
 0x1c1   :  { %v515_v4 = vmax.f32 %v477_v2, 0.0  ;;  %v492_v6 = vadd.f32 %v997_v3, %v713_v32 }
 0x1c2   :  { %v486_v7 = vpop.f32.mrf.mxu1 }
 0x1c3   :  { %v487_v8 = vadd.f32 %v713_v32, %v486_v7  ;;  %1048 = vmatprep.mubr.f32.mxu1 %v515_v4  ;;  %v518_v11 = vmax.f32 %v492_v6, 0.0 }
 0x1c4   :  { %v1000_v9 = vpop.f32.mrf.mxu1  ;;  %1049 = vmatmul.mubr.f32.gmra.mxu1 %v516_v5 }
 0x1c5   :  { %v517_v10 = vmax.f32 %v487_v8, 0.0  ;;  %v502_v12 = vadd.f32 %v1000_v9, %v713_v32 }
 0x1c6   :  { %v496_v13 = vpop.f32.mrf.mxu1 }
 0x1c7   :  { %v497_v14 = vadd.f32 %v713_v32, %v496_v13  ;;  %1051 = vmatprep.mubr.f32.mxu1 %v517_v10  ;;  %v520_v16 = vmax.f32 %v502_v12, 0.0 }
 0x1c8   :  { %1052 = vmatmul.mubr.f32.gmra.mxu1 %v518_v11 }
 0x1c9   :  { %v519_v15 = vmax.f32 %v497_v14, 0.0 }
 0x1cb   :  { %1054 = vmatprep.mubr.f32.mxu1 %v519_v15 }
 0x1cc   :  { %1055 = vmatmul.mubr.f32.gmra.mxu1 %v520_v16 }
 0x270   :  { %v1035_v18 = vpop.f32.mrf.mxu0 }
 0x271   :  { %v616_v19 = vadd.f32 %v1035_v18, %v714_v17 }
 0x272   :  { %v610_v20 = vpop.f32.mrf.mxu0 }
 0x273   :  { %690 = vst [vmem:[%s1404_s7 + $0x8] sm:$0xff] %v616_v19  ;;  %v611_v21 = vadd.f32 %v714_v17, %v610_v20 }
 0x274   :  { %v1038_v22 = vpop.f32.mrf.mxu0 }
 0x275   :  { %689 = vst [vmem:[%s1404_s7] sm:$0xff] %v611_v21  ;;  %v626_v23 = vadd.f32 %v1038_v22, %v714_v17 }
 0x276   :  { %v620_v24 = vpop.f32.mrf.mxu0 }
 0x277   :  { %692 = vst [vmem:[%s1404_s7 + $0x18] sm:$0xff] %v626_v23  ;;  %v621_v25 = vadd.f32 %v714_v17, %v620_v24 }
 0x278   :  { %v1041_v26 = vpop.f32.mrf.mxu0 }
 0x279   :  { %691 = vst [vmem:[%s1404_s7 + $0x10] sm:$0xff] %v621_v25  ;;  %v636_v27 = vadd.f32 %v1041_v26, %v714_v17 }
 0x27a   :  { %v630_v28 = vpop.f32.mrf.mxu0 }
 0x27b   :  { %694 = vst [vmem:[%s1404_s7 + $0x28] sm:$0xff] %v636_v27  ;;  %v631_v29 = vadd.f32 %v714_v17, %v630_v28 }
 0x27c   :  { %v1044_v30 = vpop.f32.mrf.mxu0 }
 0x27d   :  { %693 = vst [vmem:[%s1404_s7 + $0x20] sm:$0xff] %v631_v29  ;;  %v646_v31 = vadd.f32 %v1044_v30, %v714_v17 }
 0x27e   :  { %v640_v32 = vpop.f32.mrf.mxu0 }
 0x27f   :  { %696 = vst [vmem:[%s1404_s7 + $0x38] sm:$0xff] %v646_v31  ;;  %v641_v33 = vadd.f32 %v714_v17, %v640_v32 }
 0x280   :  { %v1047_v34 = vpop.f32.mrf.mxu1 }
 0x281   :  { %695 = vst [vmem:[%s1404_s7 + $0x30] sm:$0xff] %v641_v33  ;;  %v656_v35 = vadd.f32 %v1047_v34, %v714_v17 }
 0x282   :  { %v650_v36 = vpop.f32.mrf.mxu1 }
 0x283   :  { %698 = vst [vmem:[%s1404_s7 + $0x48] sm:$0xff] %v656_v35  ;;  %v651_v37 = vadd.f32 %v714_v17, %v650_v36 }
 0x284   :  { %v1050_v38 = vpop.f32.mrf.mxu1 }
 0x285   :  { %697 = vst [vmem:[%s1404_s7 + $0x40] sm:$0xff] %v651_v37  ;;  %v666_v39 = vadd.f32 %v1050_v38, %v714_v17 }
 0x286   :  { %v660_v40 = vpop.f32.mrf.mxu1 }
 0x287   :  { %700 = vst [vmem:[%s1404_s7 + $0x58] sm:$0xff] %v666_v39  ;;  %v661_v41 = vadd.f32 %v714_v17, %v660_v40 }
 0x288   :  { %v1053_v42 = vpop.f32.mrf.mxu1 }
 0x289   :  { %699 = vst [vmem:[%s1404_s7 + $0x50] sm:$0xff] %v661_v41  ;;  %v676_v43 = vadd.f32 %v1053_v42, %v714_v17 }
 0x28a   :  { %v670_v44 = vpop.f32.mrf.mxu1 }
 0x28b   :  { %702 = vst [vmem:[%s1404_s7 + $0x68] sm:$0xff] %v676_v43  ;;  %v671_v45 = vadd.f32 %v714_v17, %v670_v44 }
 0x28c   :  { %v1056_v46 = vpop.f32.mrf.mxu1 }
 0x28d   :  { %701 = vst [vmem:[%s1404_s7 + $0x60] sm:$0xff] %v671_v45  ;;  %v686_v47 = vadd.f32 %v1056_v46, %v714_v17 }
 0x28e   :  { %v680_v48 = vpop.f32.mrf.mxu1 }
 0x28f   :  { %704 = vst [vmem:[%s1404_s7 + $0x78] sm:$0xff] %v686_v47  ;;  %v681_v49 = vadd.f32 %v714_v17, %v680_v48 }
 0x291   :  { %703 = vst [vmem:[%s1404_s7 + $0x70] sm:$0xff] %v681_v49 }

// kernel: _forward.5
= control target key start
LH: loop header
LB: loop body
LE: loop exit
PB: predicated region body
PF: predicated region fallthrough
CT: control target
= control target key end

     0   :  { %s656_s1 = inlined_call_operand.vmem [shape: f32[128,128], index: 1, kind: input, shape index: {}]   ;;  %s657_s0 = inlined_call_operand.vmem [shape: bf16[128,128], index: 0, kind: input, shape index: {}]   ;;  %s658_s2 = inlined_call_operand.vmem [shape: f32[1,128], index: 2, kind: input, shape index: {}]   ;;  %s659_s3 = inlined_call_operand.vmem [shape: bf16[128,128], index: 3, kind: output, shape index: {}]  }
   0x1   :  { %v61_v0 = vld [vmem:[%s656_s1 + $0x78] sm:$0xff]  ;;  %v60_v1 = vld [vmem:[%s656_s1 + $0x70] sm:$0xff]  ;;  %v59_v2 = vld [vmem:[%s656_s1 + $0x68] sm:$0xff] }
   0x2   :  { %449 = vmatprep.subr.mxu0 %v61_v0  ;;  %505 = vmatprep.subr.mxu1 %v61_v0  ;;  %v58_v3 = vld [vmem:[%s656_s1 + $0x60] sm:$0xff]  ;;  %v57_v4 = vld [vmem:[%s656_s1 + $0x58] sm:$0xff]  ;;  %v56_v5 = vld [vmem:[%s656_s1 + $0x50] sm:$0xff] }
   0x3   :  { %450 = vmatpush3.msra.mxu0 %v61_v0  ;;  %521 = vmatpush3.msra.mxu1 %v61_v0  ;;  %v55_v6 = vld [vmem:[%s656_s1 + $0x48] sm:$0xff]  ;;  %v54_v7 = vld [vmem:[%s656_s1 + $0x40] sm:$0xff]  ;;  %v53_v8 = vld [vmem:[%s656_s1 + $0x38] sm:$0xff] }
   0x4   :  { %451 = vmatprep.subr.mxu0 %v60_v1  ;;  %506 = vmatprep.subr.mxu1 %v60_v1  ;;  %v52_v9 = vld [vmem:[%s656_s1 + $0x30] sm:$0xff]  ;;  %v51_v10 = vld [vmem:[%s656_s1 + $0x28] sm:$0xff]  ;;  %v50_v11 = vld [vmem:[%s656_s1 + $0x20] sm:$0xff] }
   0x5   :  { %452 = vmatpush3.msra.mxu0 %v60_v1  ;;  %522 = vmatpush3.msra.mxu1 %v60_v1  ;;  %v49_v12 = vld [vmem:[%s656_s1 + $0x18] sm:$0xff]  ;;  %v48_v13 = vld [vmem:[%s656_s1 + $0x10] sm:$0xff]  ;;  %v47_v14 = vld [vmem:[%s656_s1 + $0x8] sm:$0xff] }
   0x6   :  { %453 = vmatprep.subr.mxu0 %v59_v2  ;;  %507 = vmatprep.subr.mxu1 %v59_v2  ;;  %v332_v15 = vld [vmem:[%s657_s0] sm:$0xff]   ;;  %v403_v18 = vld [vmem:[%s657_s0 + $0x8] sm:$0xff]   ;;  %v404_v26 = vld [vmem:[%s657_s0 + $0x10] sm:$0xff]  }
   0x7   :  { %454 = vmatpush3.msra.mxu0 %v59_v2  ;;  %523 = vmatpush3.msra.mxu1 %v59_v2  ;;  %v406_v16 = vld [vmem:[%s657_s0 + $0x20] sm:$0xff]   ;;  %v407_v19 = vld [vmem:[%s657_s0 + $0x28] sm:$0xff]   ;;  %v333_v20 = vunpack.c.l.bf16 %v332_v15  ;;  %v334_v22 = vunpack.c.h.bf16 %v332_v15  ;;  %v337_v24 = vunpack.c.l.bf16 %v403_v18  ;;  %v408_v27 = vld [vmem:[%s657_s0 + $0x30] sm:$0xff]   ;;  %v338_v28 = vunpack.c.h.bf16 %v403_v18 }
   0x8   :  { %455 = vmatprep.subr.mxu0 %v58_v3  ;;  %508 = vmatprep.subr.mxu1 %v58_v3  ;;  %v46_v17 = vld [vmem:[%s656_s1] sm:$0xff]  ;;  %v349_v21 = vunpack.c.l.bf16 %v406_v16  ;;  %v350_v23 = vunpack.c.h.bf16 %v406_v16  ;;  %v353_v25 = vunpack.c.l.bf16 %v407_v19  ;;  %v354_v29 = vunpack.c.h.bf16 %v407_v19  ;;  %v405_v32 = vld [vmem:[%s657_s0 + $0x18] sm:$0xff]  }
   0x9   :  { %456 = vmatpush3.msra.mxu0 %v58_v3  ;;  %524 = vmatpush3.msra.mxu1 %v58_v3  ;;  %v341_v30 = vunpack.c.l.bf16 %v404_v26  ;;  %v357_v31 = vunpack.c.l.bf16 %v408_v27  ;;  %v409_v33 = vld [vmem:[%s657_s0 + $0x38] sm:$0xff]   ;;  %v342_v34 = vunpack.c.h.bf16 %v404_v26  ;;  %v358_v35 = vunpack.c.h.bf16 %v408_v27  ;;  %v298_v41 = vld [vmem:[%s658_s2] ss:$0 sm:$0xff] }
   0xa   :  { %457 = vmatprep.subr.mxu0 %v57_v4  ;;  %509 = vmatprep.subr.mxu1 %v57_v4  ;;  %v345_v36 = vunpack.c.l.bf16 %v405_v32  ;;  %v361_v37 = vunpack.c.l.bf16 %v409_v33  ;;  %v346_v38 = vunpack.c.h.bf16 %v405_v32  ;;  %v362_v39 = vunpack.c.h.bf16 %v409_v33 }
   0xb   :  { %458 = vmatpush3.msra.mxu0 %v57_v4  ;;  %525 = vmatpush3.msra.mxu1 %v57_v4 }
   0xc   :  { %459 = vmatprep.subr.mxu0 %v56_v5  ;;  %510 = vmatprep.subr.mxu1 %v56_v5 }
   0xd   :  { %460 = vmatpush3.msra.mxu0 %v56_v5  ;;  %526 = vmatpush3.msra.mxu1 %v56_v5 }
   0xe   :  { %461 = vmatprep.subr.mxu0 %v55_v6  ;;  %511 = vmatprep.subr.mxu1 %v55_v6 }
   0xf   :  { %462 = vmatpush3.msra.mxu0 %v55_v6  ;;  %527 = vmatpush3.msra.mxu1 %v55_v6 }
  0x10   :  { %463 = vmatprep.subr.mxu0 %v54_v7  ;;  %512 = vmatprep.subr.mxu1 %v54_v7 }
  0x11   :  { %464 = vmatpush3.msra.mxu0 %v54_v7  ;;  %528 = vmatpush3.msra.mxu1 %v54_v7 }
  0x12   :  { %465 = vmatprep.subr.mxu0 %v53_v8  ;;  %513 = vmatprep.subr.mxu1 %v53_v8 }
  0x13   :  { %466 = vmatpush3.msra.mxu0 %v53_v8  ;;  %529 = vmatpush3.msra.mxu1 %v53_v8 }
  0x14   :  { %467 = vmatprep.subr.mxu0 %v52_v9  ;;  %514 = vmatprep.subr.mxu1 %v52_v9 }
  0x15   :  { %468 = vmatpush3.msra.mxu0 %v52_v9  ;;  %530 = vmatpush3.msra.mxu1 %v52_v9 }
  0x16   :  { %469 = vmatprep.subr.mxu0 %v51_v10  ;;  %515 = vmatprep.subr.mxu1 %v51_v10 }
  0x17   :  { %470 = vmatpush3.msra.mxu0 %v51_v10  ;;  %531 = vmatpush3.msra.mxu1 %v51_v10 }
  0x18   :  { %471 = vmatprep.subr.mxu0 %v50_v11  ;;  %516 = vmatprep.subr.mxu1 %v50_v11 }
  0x19   :  { %472 = vmatpush3.msra.mxu0 %v50_v11  ;;  %532 = vmatpush3.msra.mxu1 %v50_v11 }
  0x1a   :  { %473 = vmatprep.subr.mxu0 %v49_v12  ;;  %517 = vmatprep.subr.mxu1 %v49_v12 }
  0x1b   :  { %474 = vmatpush3.msra.mxu0 %v49_v12  ;;  %533 = vmatpush3.msra.mxu1 %v49_v12 }
  0x1c   :  { %475 = vmatprep.subr.mxu0 %v48_v13  ;;  %518 = vmatprep.subr.mxu1 %v48_v13 }
  0x1d   :  { %476 = vmatpush3.msra.mxu0 %v48_v13  ;;  %534 = vmatpush3.msra.mxu1 %v48_v13 }
  0x1e   :  { %477 = vmatprep.subr.mxu0 %v47_v14  ;;  %519 = vmatprep.subr.mxu1 %v47_v14 }
  0x1f   :  { %478 = vmatpush3.msra.mxu0 %v47_v14  ;;  %535 = vmatpush3.msra.mxu1 %v47_v14 }
  0x20   :  { %479 = vmatprep.subr.mxu0 %v46_v17  ;;  %520 = vmatprep.subr.mxu1 %v46_v17 }
  0x21   :  { %480 = vmatpush3.msra.mxu0 %v46_v17  ;;  %536 = vmatpush3.msra.mxu1 %v46_v17 }
  0x22   :  { %481 = vmatprep.mubr.f32.mxu0 %v333_v20  ;;  %493 = vmatprep.mubr.f32.mxu1 %v349_v21 }
  0x23   :  { %482 = vmatmul.mubr.f32.vlgmr.msra.gmra.mxu0 %v334_v22  ;;  %494 = vmatmul.mubr.f32.vlgmr.msra.gmra.mxu1 %v350_v23 }
  0x24   :  { %484 = vmatprep.mubr.f32.mxu0 %v337_v24  ;;  %496 = vmatprep.mubr.f32.mxu1 %v353_v25 }
  0x27   :  { %485 = vmatmul.mubr.f32.gmra.mxu0 %v338_v28  ;;  %497 = vmatmul.mubr.f32.gmra.mxu1 %v354_v29 }
  0x28   :  { %487 = vmatprep.mubr.f32.mxu0 %v341_v30  ;;  %499 = vmatprep.mubr.f32.mxu1 %v357_v31 }
  0x2b   :  { %488 = vmatmul.mubr.f32.gmra.mxu0 %v342_v34  ;;  %500 = vmatmul.mubr.f32.gmra.mxu1 %v358_v35 }
  0x2c   :  { %490 = vmatprep.mubr.f32.mxu0 %v345_v36  ;;  %502 = vmatprep.mubr.f32.mxu1 %v361_v37 }
  0x2f   :  { %491 = vmatmul.mubr.f32.gmra.mxu0 %v346_v38  ;;  %503 = vmatmul.mubr.f32.gmra.mxu1 %v362_v39 }
  0xe3   :  { %v483_v40 = vpop.f32.mrf.mxu0  ;;  %v495_v42 = vpop.f32.mrf.mxu1 }
  0xe4   :  { %v141_v45 = vadd.f32 %v483_v40, %v298_v41  ;;  %v181_v46 = vadd.f32 %v495_v42, %v298_v41 }
  0xe5   :  { %v135_v43 = vpop.f32.mrf.mxu0  ;;  %v175_v44 = vpop.f32.mrf.mxu1 }
  0xe6   :  { %v136_v47 = vadd.f32 %v298_v41, %v135_v43  ;;  %v176_v48 = vadd.f32 %v298_v41, %v175_v44 }
  0xe7   :  { %v486_v49 = vpop.f32.mrf.mxu0  ;;  %v498_v50 = vpop.f32.mrf.mxu1 }
  0xe8   :  { %v366_v51 = vpack.c.bf16 %v141_v45, %v136_v47  ;;  %v386_v52 = vpack.c.bf16 %v181_v46, %v176_v48  ;;  %v151_v55 = vadd.f32 %v486_v49, %v298_v41  ;;  %v191_v56 = vadd.f32 %v498_v50, %v298_v41 }
  0xe9   :  { %v145_v53 = vpop.f32.mrf.mxu0  ;;  %v185_v54 = vpop.f32.mrf.mxu1 }
  0xea   :  { %367 = vst [vmem:[%s659_s3] sm:$0xff] %v366_v51   ;;  %413 = vst [vmem:[%s659_s3 + $0x20] sm:$0xff] %v386_v52   ;;  %v146_v57 = vadd.f32 %v298_v41, %v145_v53  ;;  %v186_v58 = vadd.f32 %v298_v41, %v185_v54 }
  0xeb   :  { %v489_v59 = vpop.f32.mrf.mxu0  ;;  %v501_v60 = vpop.f32.mrf.mxu1 }
  0xec   :  { %v371_v61 = vpack.c.bf16 %v151_v55, %v146_v57  ;;  %v391_v62 = vpack.c.bf16 %v191_v56, %v186_v58  ;;  %v161_v1 = vadd.f32 %v489_v59, %v298_v41  ;;  %v201_v2 = vadd.f32 %v501_v60, %v298_v41 }
  0xed   :  { %v155_v63 = vpop.f32.mrf.mxu0  ;;  %v195_v0 = vpop.f32.mrf.mxu1 }
  0xee   :  { %410 = vst [vmem:[%s659_s3 + $0x8] sm:$0xff] %v371_v61   ;;  %414 = vst [vmem:[%s659_s3 + $0x28] sm:$0xff] %v391_v62   ;;  %v156_v3 = vadd.f32 %v298_v41, %v155_v63  ;;  %v196_v4 = vadd.f32 %v298_v41, %v195_v0 }
  0xef   :  { %v492_v5 = vpop.f32.mrf.mxu0  ;;  %v504_v6 = vpop.f32.mrf.mxu1 }
  0xf0   :  { %v376_v7 = vpack.c.bf16 %v161_v1, %v156_v3  ;;  %v396_v8 = vpack.c.bf16 %v201_v2, %v196_v4  ;;  %v171_v11 = vadd.f32 %v492_v5, %v298_v41  ;;  %v211_v12 = vadd.f32 %v504_v6, %v298_v41 }
  0xf1   :  { %v165_v9 = vpop.f32.mrf.mxu0  ;;  %v205_v10 = vpop.f32.mrf.mxu1 }
  0xf2   :  { %411 = vst [vmem:[%s659_s3 + $0x10] sm:$0xff] %v376_v7   ;;  %415 = vst [vmem:[%s659_s3 + $0x30] sm:$0xff] %v396_v8   ;;  %v166_v13 = vadd.f32 %v298_v41, %v165_v9  ;;  %v206_v14 = vadd.f32 %v298_v41, %v205_v10 }
  0xf4   :  { %v381_v15 = vpack.c.bf16 %v171_v11, %v166_v13  ;;  %v401_v16 = vpack.c.bf16 %v211_v12, %v206_v14 }
  0xf6   :  { %412 = vst [vmem:[%s659_s3 + $0x18] sm:$0xff] %v381_v15   ;;  %416 = vst [vmem:[%s659_s3 + $0x38] sm:$0xff] %v401_v16  }

// kernel: _forward.6
= control target key start
LH: loop header
LB: loop body
LE: loop exit
PB: predicated region body
PF: predicated region fallthrough
CT: control target
= control target key end

     0   :  { %s787_s0 = inlined_call_operand.vmem [shape: bf16[128,128], index: 0, kind: input, shape index: {}]   ;;  %s788_s1 = inlined_call_operand.vmem [shape: bf16[128,128], index: 1, kind: input, shape index: {}]   ;;  %s789_s2 = inlined_call_operand.vmem [shape: bf16[128,128], index: 2, kind: output, shape index: {}]  }
   0x1   :  { %v456_v0 = vld [vmem:[%s787_s0] sm:$0xff]   ;;  %v572_v2 = vld [vmem:[%s788_s1 + $0x38] sm:$0xff]   ;;  %v559_v4 = vld [vmem:[%s787_s0 + $0x8] sm:$0xff]  }
   0x2   :  { %v457_v1 = vunpack.c.l.bf16 %v456_v0  ;;  %v458_v3 = vunpack.c.h.bf16 %v456_v0  ;;  %v571_v5 = vld [vmem:[%s788_s1 + $0x30] sm:$0xff]   ;;  %v518_v6 = vunpack.c.h.bf16 %v572_v2  ;;  %v517_v7 = vunpack.c.l.bf16 %v572_v2  ;;  %v570_v10 = vld [vmem:[%s788_s1 + $0x28] sm:$0xff]   ;;  %v569_v15 = vld [vmem:[%s788_s1 + $0x20] sm:$0xff]  }
   0x3   :  { %v461_v8 = vunpack.c.l.bf16 %v559_v4  ;;  %v514_v9 = vunpack.c.h.bf16 %v571_v5  ;;  %v513_v11 = vunpack.c.l.bf16 %v571_v5  ;;  %v462_v12 = vunpack.c.h.bf16 %v559_v4  ;;  %v560_v14 = vld [vmem:[%s787_s0 + $0x10] sm:$0xff]   ;;  %v568_v19 = vld [vmem:[%s788_s1 + $0x18] sm:$0xff]   ;;  %v566_v28 = vld [vmem:[%s788_s1 + $0x8] sm:$0xff]  }
   0x4   :  { %111 = vxpose.xlu0.b32.start [1/16] %v457_v1, 128  ;;  %612 = vmatprep.subr.mxu0 %v518_v6  ;;  %v510_v13 = vunpack.c.h.bf16 %v570_v10  ;;  %v509_v16 = vunpack.c.l.bf16 %v570_v10  ;;  %v465_v17 = vunpack.c.l.bf16 %v560_v14  ;;  %v506_v18 = vunpack.c.h.bf16 %v569_v15  ;;  %v561_v23 = vld [vmem:[%s787_s0 + $0x18] sm:$0xff]   ;;  %v567_v24 = vld [vmem:[%s788_s1 + $0x10] sm:$0xff]   ;;  %v562_v32 = vld [vmem:[%s787_s0 + $0x20] sm:$0xff]  }
   0x5   :  { %613 = vmatpush3.msra.mxu0 %v518_v6  ;;  %668 = vmatprep.subr.mxu1 %v518_v6  ;;  %v505_v20 = vunpack.c.l.bf16 %v569_v15  ;;  %v466_v21 = vunpack.c.h.bf16 %v560_v14  ;;  %v502_v22 = vunpack.c.h.bf16 %v568_v19  ;;  %v501_v25 = vunpack.c.l.bf16 %v568_v19  ;;  %v488_v33 = vld [vmem:[%s788_s1] sm:$0xff]   ;;  %v563_v39 = vld [vmem:[%s787_s0 + $0x28] sm:$0xff]   ;;  %v564_v42 = vld [vmem:[%s787_s0 + $0x30] sm:$0xff]  }
   0x6   :  { %614 = vmatprep.subr.mxu0 %v517_v7  ;;  %684 = vmatpush3.msra.mxu1 %v518_v6  ;;  %v469_v26 = vunpack.c.l.bf16 %v561_v23  ;;  %v498_v27 = vunpack.c.h.bf16 %v567_v24  ;;  %v497_v29 = vunpack.c.l.bf16 %v567_v24  ;;  %v470_v30 = vunpack.c.h.bf16 %v561_v23  ;;  %v565_v45 = vld [vmem:[%s787_s0 + $0x38] sm:$0xff]  }
   0x7   :  { %615 = vmatpush3.msra.mxu0 %v517_v7  ;;  %669 = vmatprep.subr.mxu1 %v517_v7  ;;  %v494_v31 = vunpack.c.h.bf16 %v566_v28  ;;  %v493_v34 = vunpack.c.l.bf16 %v566_v28  ;;  %v473_v35 = vunpack.c.l.bf16 %v562_v32  ;;  %v490_v36 = vunpack.c.h.bf16 %v488_v33 }
   0x8   :  { %112 = vxpose.xlu0.b32.cont [2/16] %v458_v3, 128  ;;  %616 = vmatprep.subr.mxu0 %v514_v9  ;;  %v489_v37 = vunpack.c.l.bf16 %v488_v33  ;;  %v474_v38 = vunpack.c.h.bf16 %v562_v32  ;;  %v477_v40 = vunpack.c.l.bf16 %v563_v39  ;;  %v478_v41 = vunpack.c.h.bf16 %v563_v39 }
   0x9   :  { %617 = vmatpush3.msra.mxu0 %v514_v9  ;;  %685 = vmatpush3.msra.mxu1 %v517_v7  ;;  %v481_v43 = vunpack.c.l.bf16 %v564_v42  ;;  %v482_v44 = vunpack.c.h.bf16 %v564_v42  ;;  %v485_v46 = vunpack.c.l.bf16 %v565_v45  ;;  %v486_v47 = vunpack.c.h.bf16 %v565_v45 }
   0xa   :  { %618 = vmatprep.subr.mxu0 %v513_v11  ;;  %670 = vmatprep.subr.mxu1 %v514_v9 }
   0xb   :  { %619 = vmatpush3.msra.mxu0 %v513_v11  ;;  %686 = vmatpush3.msra.mxu1 %v514_v9 }
   0xc   :  { %113 = vxpose.xlu0.b32.cont [3/16] %v461_v8, 128  ;;  %620 = vmatprep.subr.mxu0 %v510_v13 }
   0xd   :  { %621 = vmatpush3.msra.mxu0 %v510_v13  ;;  %671 = vmatprep.subr.mxu1 %v513_v11 }
   0xe   :  { %622 = vmatprep.subr.mxu0 %v509_v16  ;;  %687 = vmatpush3.msra.mxu1 %v513_v11 }
   0xf   :  { %623 = vmatpush3.msra.mxu0 %v509_v16  ;;  %672 = vmatprep.subr.mxu1 %v510_v13 }
  0x10   :  { %114 = vxpose.xlu0.b32.cont [4/16] %v462_v12, 128  ;;  %624 = vmatprep.subr.mxu0 %v506_v18 }
  0x11   :  { %625 = vmatpush3.msra.mxu0 %v506_v18  ;;  %688 = vmatpush3.msra.mxu1 %v510_v13 }
  0x12   :  { %626 = vmatprep.subr.mxu0 %v505_v20  ;;  %673 = vmatprep.subr.mxu1 %v509_v16 }
  0x13   :  { %627 = vmatpush3.msra.mxu0 %v505_v20  ;;  %689 = vmatpush3.msra.mxu1 %v509_v16 }
  0x14   :  { %115 = vxpose.xlu0.b32.cont [5/16] %v465_v17, 128  ;;  %628 = vmatprep.subr.mxu0 %v502_v22 }
  0x15   :  { %629 = vmatpush3.msra.mxu0 %v502_v22  ;;  %674 = vmatprep.subr.mxu1 %v506_v18 }
  0x16   :  { %630 = vmatprep.subr.mxu0 %v501_v25  ;;  %690 = vmatpush3.msra.mxu1 %v506_v18 }
  0x17   :  { %631 = vmatpush3.msra.mxu0 %v501_v25  ;;  %675 = vmatprep.subr.mxu1 %v505_v20 }
  0x18   :  { %116 = vxpose.xlu0.b32.cont [6/16] %v466_v21, 128  ;;  %632 = vmatprep.subr.mxu0 %v498_v27 }
  0x19   :  { %633 = vmatpush3.msra.mxu0 %v498_v27  ;;  %691 = vmatpush3.msra.mxu1 %v505_v20 }
  0x1a   :  { %634 = vmatprep.subr.mxu0 %v497_v29  ;;  %676 = vmatprep.subr.mxu1 %v502_v22 }
  0x1b   :  { %635 = vmatpush3.msra.mxu0 %v497_v29  ;;  %692 = vmatpush3.msra.mxu1 %v502_v22 }
  0x1c   :  { %117 = vxpose.xlu0.b32.cont [7/16] %v469_v26, 128  ;;  %636 = vmatprep.subr.mxu0 %v494_v31 }
  0x1d   :  { %637 = vmatpush3.msra.mxu0 %v494_v31  ;;  %677 = vmatprep.subr.mxu1 %v501_v25 }
  0x1e   :  { %638 = vmatprep.subr.mxu0 %v493_v34  ;;  %693 = vmatpush3.msra.mxu1 %v501_v25 }
  0x1f   :  { %639 = vmatpush3.msra.mxu0 %v493_v34  ;;  %678 = vmatprep.subr.mxu1 %v498_v27 }
  0x20   :  { %118 = vxpose.xlu0.b32.cont [8/16] %v470_v30, 128  ;;  %640 = vmatprep.subr.mxu0 %v490_v36 }
  0x21   :  { %641 = vmatpush3.msra.mxu0 %v490_v36  ;;  %694 = vmatpush3.msra.mxu1 %v498_v27 }
  0x22   :  { %642 = vmatprep.subr.mxu0 %v489_v37  ;;  %679 = vmatprep.subr.mxu1 %v497_v29 }
  0x23   :  { %643 = vmatpush3.msra.mxu0 %v489_v37  ;;  %695 = vmatpush3.msra.mxu1 %v497_v29 }
  0x24   :  { %119 = vxpose.xlu0.b32.cont [9/16] %v473_v35, 128  ;;  %680 = vmatprep.subr.mxu1 %v494_v31 }
  0x25   :  { %696 = vmatpush3.msra.mxu1 %v494_v31 }
  0x26   :  { %681 = vmatprep.subr.mxu1 %v493_v34 }
  0x27   :  { %697 = vmatpush3.msra.mxu1 %v493_v34 }
  0x28   :  { %120 = vxpose.xlu0.b32.cont [10/16] %v474_v38, 128  ;;  %682 = vmatprep.subr.mxu1 %v490_v36 }
  0x29   :  { %698 = vmatpush3.msra.mxu1 %v490_v36 }
  0x2a   :  { %683 = vmatprep.subr.mxu1 %v489_v37 }
  0x2b   :  { %699 = vmatpush3.msra.mxu1 %v489_v37 }
  0x2c   :  { %121 = vxpose.xlu0.b32.cont [11/16] %v477_v40, 128 }
  0x30   :  { %122 = vxpose.xlu0.b32.cont [12/16] %v478_v41, 128 }
  0x34   :  { %123 = vxpose.xlu0.b32.cont [13/16] %v481_v43, 128 }
  0x38   :  { %124 = vxpose.xlu0.b32.cont [14/16] %v482_v44, 128 }
  0x3c   :  { %125 = vxpose.xlu0.b32.cont [15/16] %v485_v46, 128 }
  0x40   :  { %126 = vxpose.xlu0.b32.end [16/16] %v486_v47, 128 }
  0x80   :  { %v127_v48 = vpop.trf.xlu0 }
  0x81   :  { %644 = vmatprep.mubr.f32.mxu0 %v127_v48 }
  0x84   :  { %v128_v49 = vpop.trf.xlu0 }
  0x85   :  { %645 = vmatmul.mubr.f32.vlgmr.msra.gmra.mxu0 %v128_v49 }
  0x88   :  { %v129_v50 = vpop.trf.xlu0 }
  0x89   :  { %647 = vmatprep.mubr.f32.mxu0 %v129_v50 }
  0x8c   :  { %v130_v51 = vpop.trf.xlu0 }
  0x8d   :  { %648 = vmatmul.mubr.f32.gmra.mxu0 %v130_v51 }
  0x90   :  { %v131_v52 = vpop.trf.xlu0 }
  0x91   :  { %650 = vmatprep.mubr.f32.mxu0 %v131_v52 }
  0x94   :  { %v132_v53 = vpop.trf.xlu0 }
  0x95   :  { %651 = vmatmul.mubr.f32.gmra.mxu0 %v132_v53 }
  0x98   :  { %v133_v54 = vpop.trf.xlu0 }
  0x99   :  { %653 = vmatprep.mubr.f32.mxu0 %v133_v54 }
  0x9c   :  { %v134_v55 = vpop.trf.xlu0 }
  0x9d   :  { %654 = vmatmul.mubr.f32.gmra.mxu0 %v134_v55 }
  0xa0   :  { %v135_v56 = vpop.trf.xlu0 }
  0xa1   :  { %656 = vmatprep.mubr.f32.mxu1 %v135_v56 }
  0xa4   :  { %v136_v57 = vpop.trf.xlu0 }
  0xa5   :  { %657 = vmatmul.mubr.f32.vlgmr.msra.gmra.mxu1 %v136_v57 }
  0xa8   :  { %v137_v58 = vpop.trf.xlu0 }
  0xa9   :  { %659 = vmatprep.mubr.f32.mxu1 %v137_v58 }
  0xac   :  { %v138_v59 = vpop.trf.xlu0 }
  0xad   :  { %660 = vmatmul.mubr.f32.gmra.mxu1 %v138_v59 }
  0xb0   :  { %v139_v60 = vpop.trf.xlu0 }
  0xb1   :  { %662 = vmatprep.mubr.f32.mxu1 %v139_v60 }
  0xb4   :  { %v140_v61 = vpop.trf.xlu0 }
  0xb5   :  { %663 = vmatmul.mubr.f32.gmra.mxu1 %v140_v61 }
  0xb8   :  { %v141_v62 = vpop.trf.xlu0 }
  0xb9   :  { %665 = vmatprep.mubr.f32.mxu1 %v141_v62 }
  0xbc   :  { %v142_v63 = vpop.trf.xlu0 }
  0xbd   :  { %666 = vmatmul.mubr.f32.gmra.mxu1 %v142_v63 }
 0x145   :  { %v646_v0 = vpop.f32.mrf.mxu0 }
 0x147   :  { %v209_v1 = vpop.f32.mrf.mxu0 }
 0x148   :  { %v522_v2 = vpack.c.bf16 %v646_v0, %v209_v1 }
 0x14a   :  { %523 = vst [vmem:[%s789_s2] sm:$0xff] %v522_v2  }
 0x14d   :  { %v649_v3 = vpop.f32.mrf.mxu0 }
 0x14f   :  { %v219_v4 = vpop.f32.mrf.mxu0 }
 0x150   :  { %v527_v5 = vpack.c.bf16 %v649_v3, %v219_v4 }
 0x152   :  { %573 = vst [vmem:[%s789_s2 + $0x8] sm:$0xff] %v527_v5  }
 0x155   :  { %v652_v6 = vpop.f32.mrf.mxu0 }
 0x157   :  { %v229_v7 = vpop.f32.mrf.mxu0 }
 0x158   :  { %v532_v8 = vpack.c.bf16 %v652_v6, %v229_v7 }
 0x15a   :  { %574 = vst [vmem:[%s789_s2 + $0x10] sm:$0xff] %v532_v8  }
 0x15d   :  { %v655_v9 = vpop.f32.mrf.mxu0 }
 0x15f   :  { %v239_v10 = vpop.f32.mrf.mxu0 }
 0x160   :  { %v537_v11 = vpack.c.bf16 %v655_v9, %v239_v10 }
 0x162   :  { %575 = vst [vmem:[%s789_s2 + $0x18] sm:$0xff] %v537_v11  }
 0x165   :  { %v658_v12 = vpop.f32.mrf.mxu1 }
 0x167   :  { %v249_v13 = vpop.f32.mrf.mxu1 }
 0x168   :  { %v542_v14 = vpack.c.bf16 %v658_v12, %v249_v13 }
 0x16a   :  { %576 = vst [vmem:[%s789_s2 + $0x20] sm:$0xff] %v542_v14  }
 0x16d   :  { %v661_v15 = vpop.f32.mrf.mxu1 }
 0x16f   :  { %v259_v16 = vpop.f32.mrf.mxu1 }
 0x170   :  { %v547_v17 = vpack.c.bf16 %v661_v15, %v259_v16 }
 0x172   :  { %577 = vst [vmem:[%s789_s2 + $0x28] sm:$0xff] %v547_v17  }
 0x175   :  { %v664_v18 = vpop.f32.mrf.mxu1 }
 0x177   :  { %v269_v19 = vpop.f32.mrf.mxu1 }
 0x178   :  { %v552_v20 = vpack.c.bf16 %v664_v18, %v269_v19 }
 0x17a   :  { %578 = vst [vmem:[%s789_s2 + $0x30] sm:$0xff] %v552_v20  }
 0x17d   :  { %v667_v21 = vpop.f32.mrf.mxu1 }
 0x17f   :  { %v279_v22 = vpop.f32.mrf.mxu1 }
 0x180   :  { %v557_v23 = vpack.c.bf16 %v667_v21, %v279_v22 }
 0x182   :  { %579 = vst [vmem:[%s789_s2 + $0x38] sm:$0xff] %v557_v23  }

// kernel: _forward.7
= control target key start
LH: loop header
LB: loop body
LE: loop exit
PB: predicated region body
PF: predicated region fallthrough
CT: control target
= control target key end

     0   :  { %s1067_s1 = inlined_call_operand.vmem [shape: bf16[128,128], index: 1, kind: input, shape index: {}]   ;;  %s1068_s0 = inlined_call_operand.vmem [shape: bf16[128,128], index: 0, kind: input, shape index: {}]   ;;  %s1069_s2 = inlined_call_operand.vmem [shape: f32[128,128], index: 2, kind: input, shape index: {}]   ;;  %s1070_s3 = inlined_call_operand.vmem [shape: f32[1,128], index: 3, kind: input, shape index: {}]   ;;  %s1071_s4 = inlined_call_operand.vmem [shape: bf16[128,128], index: 4, kind: output, shape index: {}]  }
   0x1   :  { %v731_v0 = vld [vmem:[%s1067_s1 + $0x38] sm:$0xff]   ;;  %v730_v1 = vld [vmem:[%s1067_s1 + $0x30] sm:$0xff]   ;;  %v949_v4 = vld [vmem:[%s1068_s0] sm:$0xff]  }
   0x2   :  { %v676_v2 = vunpack.c.l.bf16 %v731_v0  ;;  %v677_v3 = vunpack.c.h.bf16 %v731_v0  ;;  %v673_v5 = vunpack.c.h.bf16 %v730_v1  ;;  %v729_v6 = vld [vmem:[%s1067_s1 + $0x28] sm:$0xff]   ;;  %v672_v7 = vunpack.c.l.bf16 %v730_v1  ;;  %v344_v9 = vld [vmem:[%s1069_s2 + $0x78] sm:$0xff]  ;;  %v343_v10 = vld [vmem:[%s1069_s2 + $0x70] sm:$0xff] }
   0x3   :  { %v616_v8 = vunpack.c.l.bf16 %v949_v4  ;;  %859 = vmatprep.subr.mxu1 %v344_v9  ;;  %v669_v11 = vunpack.c.h.bf16 %v729_v6  ;;  %v728_v12 = vld [vmem:[%s1067_s1 + $0x20] sm:$0xff]   ;;  %v342_v13 = vld [vmem:[%s1069_s2 + $0x68] sm:$0xff]  ;;  %v668_v14 = vunpack.c.l.bf16 %v729_v6  ;;  %v727_v17 = vld [vmem:[%s1067_s1 + $0x18] sm:$0xff]   ;;  %v617_v40 = vunpack.c.h.bf16 %v949_v4 }
   0x4   :  { %803 = vmatprep.subr.mxu0 %v677_v3  ;;  %860 = vmatpush3.msra.mxu1 %v344_v9  ;;  %v341_v15 = vld [vmem:[%s1069_s2 + $0x60] sm:$0xff]  ;;  %v665_v16 = vunpack.c.h.bf16 %v728_v12  ;;  %v340_v18 = vld [vmem:[%s1069_s2 + $0x58] sm:$0xff]  ;;  %v664_v19 = vunpack.c.l.bf16 %v728_v12  ;;  %v339_v20 = vld [vmem:[%s1069_s2 + $0x50] sm:$0xff]  ;;  %v661_v21 = vunpack.c.h.bf16 %v727_v17  ;;  %v660_v24 = vunpack.c.l.bf16 %v727_v17 }
   0x5   :  { %804 = vmatpush3.msra.mxu0 %v677_v3  ;;  %835 = vmatprep.mubr.f32.mxu0 %v616_v8  ;;  %v726_v22 = vld [vmem:[%s1067_s1 + $0x10] sm:$0xff]   ;;  %v338_v23 = vld [vmem:[%s1069_s2 + $0x48] sm:$0xff]  ;;  %v337_v25 = vld [vmem:[%s1069_s2 + $0x40] sm:$0xff] }
   0x6   :  { %805 = vmatprep.subr.mxu0 %v676_v2  ;;  %861 = vmatprep.subr.mxu1 %v343_v10  ;;  %v657_v26 = vunpack.c.h.bf16 %v726_v22  ;;  %v725_v27 = vld [vmem:[%s1067_s1 + $0x8] sm:$0xff]   ;;  %v336_v28 = vld [vmem:[%s1069_s2 + $0x38] sm:$0xff]  ;;  %v656_v29 = vunpack.c.l.bf16 %v726_v22  ;;  %v335_v30 = vld [vmem:[%s1069_s2 + $0x30] sm:$0xff] }
   0x7   :  { %806 = vmatpush3.msra.mxu0 %v676_v2  ;;  %862 = vmatpush3.msra.mxu1 %v343_v10  ;;  %v653_v31 = vunpack.c.h.bf16 %v725_v27  ;;  %v647_v32 = vld [vmem:[%s1067_s1] sm:$0xff]   ;;  %v334_v33 = vld [vmem:[%s1069_s2 + $0x28] sm:$0xff]  ;;  %v652_v34 = vunpack.c.l.bf16 %v725_v27  ;;  %v332_v37 = vld [vmem:[%s1069_s2 + $0x18] sm:$0xff] }
   0x8   :  { %807 = vmatprep.subr.mxu0 %v673_v5  ;;  %863 = vmatprep.subr.mxu1 %v342_v13  ;;  %v333_v35 = vld [vmem:[%s1069_s2 + $0x20] sm:$0xff]  ;;  %v649_v36 = vunpack.c.h.bf16 %v647_v32  ;;  %v648_v38 = vunpack.c.l.bf16 %v647_v32  ;;  %v718_v39 = vld [vmem:[%s1068_s0 + $0x8] sm:$0xff]   ;;  %v719_v42 = vld [vmem:[%s1068_s0 + $0x10] sm:$0xff]  }
   0x9   :  { %808 = vmatpush3.msra.mxu0 %v673_v5  ;;  %864 = vmatpush3.msra.mxu1 %v342_v13  ;;  %v620_v41 = vunpack.c.l.bf16 %v718_v39  ;;  %v621_v43 = vunpack.c.h.bf16 %v718_v39  ;;  %v624_v44 = vunpack.c.l.bf16 %v719_v42  ;;  %v720_v45 = vld [vmem:[%s1068_s0 + $0x18] sm:$0xff]   ;;  %v625_v46 = vunpack.c.h.bf16 %v719_v42  ;;  %v721_v48 = vld [vmem:[%s1068_s0 + $0x20] sm:$0xff]   ;;  %v722_v51 = vld [vmem:[%s1068_s0 + $0x28] sm:$0xff]  }
   0xa   :  { %809 = vmatprep.subr.mxu0 %v672_v7  ;;  %865 = vmatprep.subr.mxu1 %v341_v15  ;;  %v628_v47 = vunpack.c.l.bf16 %v720_v45  ;;  %v629_v49 = vunpack.c.h.bf16 %v720_v45  ;;  %v632_v50 = vunpack.c.l.bf16 %v721_v48  ;;  %v633_v52 = vunpack.c.h.bf16 %v721_v48  ;;  %v723_v54 = vld [vmem:[%s1068_s0 + $0x30] sm:$0xff]   ;;  %v724_v57 = vld [vmem:[%s1068_s0 + $0x38] sm:$0xff]   ;;  %v330_v62 = vld [vmem:[%s1069_s2 + $0x8] sm:$0xff] }
   0xb   :  { %810 = vmatpush3.msra.mxu0 %v672_v7  ;;  %866 = vmatpush3.msra.mxu1 %v341_v15  ;;  %v636_v53 = vunpack.c.l.bf16 %v722_v51  ;;  %v637_v55 = vunpack.c.h.bf16 %v722_v51  ;;  %v640_v56 = vunpack.c.l.bf16 %v723_v54  ;;  %v641_v58 = vunpack.c.h.bf16 %v723_v54  ;;  %v331_v61 = vld [vmem:[%s1069_s2 + $0x10] sm:$0xff]  ;;  %v329_v63 = vld [vmem:[%s1069_s2] sm:$0xff] }
   0xc   :  { %811 = vmatprep.subr.mxu0 %v669_v11  ;;  %867 = vmatprep.subr.mxu1 %v340_v18  ;;  %v644_v59 = vunpack.c.l.bf16 %v724_v57  ;;  %v645_v60 = vunpack.c.h.bf16 %v724_v57 }
   0xd   :  { %812 = vmatpush3.msra.mxu0 %v669_v11  ;;  %868 = vmatpush3.msra.mxu1 %v340_v18 }
   0xe   :  { %813 = vmatprep.subr.mxu0 %v668_v14  ;;  %869 = vmatprep.subr.mxu1 %v339_v20 }
   0xf   :  { %814 = vmatpush3.msra.mxu0 %v668_v14  ;;  %870 = vmatpush3.msra.mxu1 %v339_v20 }
  0x10   :  { %815 = vmatprep.subr.mxu0 %v665_v16  ;;  %871 = vmatprep.subr.mxu1 %v338_v23 }
  0x11   :  { %816 = vmatpush3.msra.mxu0 %v665_v16  ;;  %872 = vmatpush3.msra.mxu1 %v338_v23 }
  0x12   :  { %817 = vmatprep.subr.mxu0 %v664_v19  ;;  %873 = vmatprep.subr.mxu1 %v337_v25 }
  0x13   :  { %818 = vmatpush3.msra.mxu0 %v664_v19  ;;  %874 = vmatpush3.msra.mxu1 %v337_v25 }
  0x14   :  { %819 = vmatprep.subr.mxu0 %v661_v21  ;;  %875 = vmatprep.subr.mxu1 %v336_v28 }
  0x15   :  { %820 = vmatpush3.msra.mxu0 %v661_v21  ;;  %876 = vmatpush3.msra.mxu1 %v336_v28 }
  0x16   :  { %821 = vmatprep.subr.mxu0 %v660_v24  ;;  %877 = vmatprep.subr.mxu1 %v335_v30 }
  0x17   :  { %822 = vmatpush3.msra.mxu0 %v660_v24  ;;  %878 = vmatpush3.msra.mxu1 %v335_v30 }
  0x18   :  { %823 = vmatprep.subr.mxu0 %v657_v26  ;;  %879 = vmatprep.subr.mxu1 %v334_v33 }
  0x19   :  { %824 = vmatpush3.msra.mxu0 %v657_v26  ;;  %880 = vmatpush3.msra.mxu1 %v334_v33  ;;  %v581_v33 = vld [vmem:[%s1070_s3] ss:$0 sm:$0xff] }
  0x1a   :  { %825 = vmatprep.subr.mxu0 %v656_v29  ;;  %881 = vmatprep.subr.mxu1 %v333_v35 }
  0x1b   :  { %826 = vmatpush3.msra.mxu0 %v656_v29  ;;  %882 = vmatpush3.msra.mxu1 %v333_v35 }
  0x1c   :  { %827 = vmatprep.subr.mxu0 %v653_v31  ;;  %883 = vmatprep.subr.mxu1 %v332_v37 }
  0x1d   :  { %828 = vmatpush3.msra.mxu0 %v653_v31  ;;  %884 = vmatpush3.msra.mxu1 %v332_v37 }
  0x1e   :  { %829 = vmatprep.subr.mxu0 %v652_v34  ;;  %885 = vmatprep.subr.mxu1 %v331_v61 }
  0x1f   :  { %830 = vmatpush3.msra.mxu0 %v652_v34  ;;  %886 = vmatpush3.msra.mxu1 %v331_v61 }
  0x20   :  { %831 = vmatprep.subr.mxu0 %v649_v36  ;;  %887 = vmatprep.subr.mxu1 %v330_v62 }
  0x21   :  { %832 = vmatpush3.msra.mxu0 %v649_v36  ;;  %888 = vmatpush3.msra.mxu1 %v330_v62 }
  0x22   :  { %833 = vmatprep.subr.mxu0 %v648_v38  ;;  %889 = vmatprep.subr.mxu1 %v329_v63 }
  0x23   :  { %834 = vmatpush3.msra.mxu0 %v648_v38  ;;  %890 = vmatpush3.msra.mxu1 %v329_v63 }
  0x24   :  { %836 = vmatmul.mubr.f32.vlgmr.msra.gmra.mxu0 %v617_v40 }
  0x25   :  { %838 = vmatprep.mubr.f32.mxu0 %v620_v41 }
  0x28   :  { %839 = vmatmul.mubr.f32.gmra.mxu0 %v621_v43 }
  0x29   :  { %841 = vmatprep.mubr.f32.mxu0 %v624_v44 }
  0x2c   :  { %842 = vmatmul.mubr.f32.gmra.mxu0 %v625_v46 }
  0x2d   :  { %844 = vmatprep.mubr.f32.mxu0 %v628_v47 }
  0x30   :  { %845 = vmatmul.mubr.f32.gmra.mxu0 %v629_v49 }
  0x31   :  { %847 = vmatprep.mubr.f32.mxu0 %v632_v50 }
  0x34   :  { %848 = vmatmul.mubr.f32.gmra.mxu0 %v633_v52 }
  0x35   :  { %850 = vmatprep.mubr.f32.mxu0 %v636_v53 }
  0x38   :  { %851 = vmatmul.mubr.f32.gmra.mxu0 %v637_v55 }
  0x39   :  { %853 = vmatprep.mubr.f32.mxu0 %v640_v56 }
  0x3c   :  { %854 = vmatmul.mubr.f32.gmra.mxu0 %v641_v58 }
  0x3d   :  { %856 = vmatprep.mubr.f32.mxu0 %v644_v59 }
  0x40   :  { %857 = vmatmul.mubr.f32.gmra.mxu0 %v645_v60 }
  0xe4   :  { %v837_v0 = vpop.f32.mrf.mxu0 }
  0xe5   :  { %v314_v3 = vmax.f32 %v837_v0, 0.0 }
  0xe6   :  { %v183_v1 = vpop.f32.mrf.mxu0 }
  0xe7   :  { %v313_v2 = vmax.f32 %v183_v1, 0.0 }
  0xe8   :  { %v840_v4 = vpop.f32.mrf.mxu0 }
  0xe9   :  { %891 = vmatprep.mubr.f32.mxu1 %v313_v2  ;;  %v316_v7 = vmax.f32 %v840_v4, 0.0 }
  0xea   :  { %v193_v5 = vpop.f32.mrf.mxu0  ;;  %892 = vmatmul.mubr.f32.vlgmr.msra.gmra.mxu1 %v314_v3 }
  0xeb   :  { %v315_v6 = vmax.f32 %v193_v5, 0.0 }
  0xec   :  { %v843_v8 = vpop.f32.mrf.mxu0 }
  0xed   :  { %894 = vmatprep.mubr.f32.mxu1 %v315_v6  ;;  %v318_v11 = vmax.f32 %v843_v8, 0.0 }
  0xee   :  { %v203_v9 = vpop.f32.mrf.mxu0  ;;  %895 = vmatmul.mubr.f32.gmra.mxu1 %v316_v7 }
  0xef   :  { %v317_v10 = vmax.f32 %v203_v9, 0.0 }
  0xf0   :  { %v846_v12 = vpop.f32.mrf.mxu0 }
  0xf1   :  { %897 = vmatprep.mubr.f32.mxu1 %v317_v10  ;;  %v320_v15 = vmax.f32 %v846_v12, 0.0 }
  0xf2   :  { %v213_v13 = vpop.f32.mrf.mxu0  ;;  %898 = vmatmul.mubr.f32.gmra.mxu1 %v318_v11 }
  0xf3   :  { %v319_v14 = vmax.f32 %v213_v13, 0.0 }
  0xf4   :  { %v849_v16 = vpop.f32.mrf.mxu0 }
  0xf5   :  { %900 = vmatprep.mubr.f32.mxu1 %v319_v14  ;;  %v322_v19 = vmax.f32 %v849_v16, 0.0 }
  0xf6   :  { %v223_v17 = vpop.f32.mrf.mxu0  ;;  %901 = vmatmul.mubr.f32.gmra.mxu1 %v320_v15 }
  0xf7   :  { %v321_v18 = vmax.f32 %v223_v17, 0.0 }
  0xf8   :  { %v852_v20 = vpop.f32.mrf.mxu0 }
  0xf9   :  { %903 = vmatprep.mubr.f32.mxu1 %v321_v18  ;;  %v324_v23 = vmax.f32 %v852_v20, 0.0 }
  0xfa   :  { %v233_v21 = vpop.f32.mrf.mxu0  ;;  %904 = vmatmul.mubr.f32.gmra.mxu1 %v322_v19 }
  0xfb   :  { %v323_v22 = vmax.f32 %v233_v21, 0.0 }
  0xfc   :  { %v855_v24 = vpop.f32.mrf.mxu0 }
  0xfd   :  { %906 = vmatprep.mubr.f32.mxu1 %v323_v22  ;;  %v326_v27 = vmax.f32 %v855_v24, 0.0 }
  0xfe   :  { %v243_v25 = vpop.f32.mrf.mxu0  ;;  %907 = vmatmul.mubr.f32.gmra.mxu1 %v324_v23 }
  0xff   :  { %v325_v26 = vmax.f32 %v243_v25, 0.0 }
 0x100   :  { %v858_v28 = vpop.f32.mrf.mxu0 }
 0x101   :  { %909 = vmatprep.mubr.f32.mxu1 %v325_v26  ;;  %v328_v31 = vmax.f32 %v858_v28, 0.0 }
 0x102   :  { %v253_v29 = vpop.f32.mrf.mxu0  ;;  %910 = vmatmul.mubr.f32.gmra.mxu1 %v326_v27 }
 0x103   :  { %v327_v30 = vmax.f32 %v253_v29, 0.0 }
 0x105   :  { %912 = vmatprep.mubr.f32.mxu1 %v327_v30 }
 0x106   :  { %913 = vmatmul.mubr.f32.gmra.mxu1 %v328_v31 }
 0x1aa   :  { %v893_v32 = vpop.f32.mrf.mxu1 }
 0x1ab   :  { %v424_v35 = vadd.f32 %v893_v32, %v581_v33 }
 0x1ac   :  { %v418_v34 = vpop.f32.mrf.mxu1 }
 0x1ad   :  { %v419_v36 = vadd.f32 %v581_v33, %v418_v34 }
 0x1ae   :  { %v896_v37 = vpop.f32.mrf.mxu1 }
 0x1af   :  { %v681_v38 = vpack.c.bf16 %v424_v35, %v419_v36  ;;  %v434_v40 = vadd.f32 %v896_v37, %v581_v33 }
 0x1b0   :  { %v428_v39 = vpop.f32.mrf.mxu1 }
 0x1b1   :  { %682 = vst [vmem:[%s1071_s4] sm:$0xff] %v681_v38   ;;  %v429_v41 = vadd.f32 %v581_v33, %v428_v39 }
 0x1b2   :  { %v899_v42 = vpop.f32.mrf.mxu1 }
 0x1b3   :  { %v686_v43 = vpack.c.bf16 %v434_v40, %v429_v41  ;;  %v444_v45 = vadd.f32 %v899_v42, %v581_v33 }
 0x1b4   :  { %v438_v44 = vpop.f32.mrf.mxu1 }
 0x1b5   :  { %732 = vst [vmem:[%s1071_s4 + $0x8] sm:$0xff] %v686_v43   ;;  %v439_v46 = vadd.f32 %v581_v33, %v438_v44 }
 0x1b6   :  { %v902_v47 = vpop.f32.mrf.mxu1 }
 0x1b7   :  { %v691_v48 = vpack.c.bf16 %v444_v45, %v439_v46  ;;  %v454_v50 = vadd.f32 %v902_v47, %v581_v33 }
 0x1b8   :  { %v448_v49 = vpop.f32.mrf.mxu1 }
 0x1b9   :  { %733 = vst [vmem:[%s1071_s4 + $0x10] sm:$0xff] %v691_v48   ;;  %v449_v51 = vadd.f32 %v581_v33, %v448_v49 }
 0x1ba   :  { %v905_v52 = vpop.f32.mrf.mxu1 }
 0x1bb   :  { %v696_v53 = vpack.c.bf16 %v454_v50, %v449_v51  ;;  %v464_v55 = vadd.f32 %v905_v52, %v581_v33 }
 0x1bc   :  { %v458_v54 = vpop.f32.mrf.mxu1 }
 0x1bd   :  { %734 = vst [vmem:[%s1071_s4 + $0x18] sm:$0xff] %v696_v53   ;;  %v459_v56 = vadd.f32 %v581_v33, %v458_v54 }
 0x1be   :  { %v908_v57 = vpop.f32.mrf.mxu1 }
 0x1bf   :  { %v701_v58 = vpack.c.bf16 %v464_v55, %v459_v56  ;;  %v474_v60 = vadd.f32 %v908_v57, %v581_v33 }
 0x1c0   :  { %v468_v59 = vpop.f32.mrf.mxu1 }
 0x1c1   :  { %735 = vst [vmem:[%s1071_s4 + $0x20] sm:$0xff] %v701_v58   ;;  %v469_v61 = vadd.f32 %v581_v33, %v468_v59 }
 0x1c2   :  { %v911_v62 = vpop.f32.mrf.mxu1 }
 0x1c3   :  { %v706_v63 = vpack.c.bf16 %v474_v60, %v469_v61  ;;  %v484_v1 = vadd.f32 %v911_v62, %v581_v33 }
 0x1c4   :  { %v478_v0 = vpop.f32.mrf.mxu1 }
 0x1c5   :  { %736 = vst [vmem:[%s1071_s4 + $0x28] sm:$0xff] %v706_v63   ;;  %v479_v2 = vadd.f32 %v581_v33, %v478_v0 }
 0x1c6   :  { %v914_v3 = vpop.f32.mrf.mxu1 }
 0x1c7   :  { %v711_v4 = vpack.c.bf16 %v484_v1, %v479_v2  ;;  %v494_v6 = vadd.f32 %v914_v3, %v581_v33 }
 0x1c8   :  { %v488_v5 = vpop.f32.mrf.mxu1 }
 0x1c9   :  { %737 = vst [vmem:[%s1071_s4 + $0x30] sm:$0xff] %v711_v4   ;;  %v489_v7 = vadd.f32 %v581_v33, %v488_v5 }
 0x1cb   :  { %v716_v8 = vpack.c.bf16 %v494_v6, %v489_v7 }
 0x1cd   :  { %738 = vst [vmem:[%s1071_s4 + $0x38] sm:$0xff] %v716_v8  }

</bundles_post_ra>
